<compile_context>
chip_gen: v7x
topology: tpu7x:2x2x1
jax: 0.10.0
libtpu: 0.0.40
codegen_flags: <defaults>
</compile_context>

<pallas_src>
import functools

import numpy as np
import jax
import jax.numpy as jnp
from jax import lax
from jax.experimental import pallas as pl
from jax.experimental.pallas import tpu as pltpu

_CompilerParams = getattr(pltpu, "CompilerParams", None)

LANE = 128


def _out_dim(n, k, s):
    return (n - k) // s + 1


def _round_up(n, m):
    return ((n + m - 1) // m) * m


# ----------------------------- fused Pallas kernel --------------------------- #
def _fused_kernel(x_ref, w1p_ref, b1_ref, w2p_ref, b2_ref,
                  w1d_ref, b1d_ref, w2d_ref, b2d_ref, o_ref, *, dims):
    B = dims["B"]
    Hh, Ho1, Ho2 = dims["Hh"], dims["Ho1"], dims["Ho2"]
    KH1, KH2 = dims["KH1"], dims["KH2"]
    L_inp, L1p, L2p = dims["L_inp"], dims["L1p"], dims["L2p"]

    x = x_ref[...]                                            # (B, 2*Hh, L_inp)

    # ---- conv1 + ReLU: tap-wise accumulation over kh, batch folded into rows.
    # Rows of x are (parity, hh); tap kh maps to row (kh%2)*Hh + ho + kh//2, so
    # each tap is a contiguous row slice -> one (B*Ho1, 128)x(128, 128) matmul.
    def tap1(kh):
        par, off = kh % 2, kh // 2
        lhs = x[:, par * Hh + off: par * Hh + off + Ho1, :]
        return jnp.dot(lhs.reshape(B * Ho1, L_inp), w1p_ref[kh],
                       preferred_element_type=jnp.float32)

    a1 = tap1(0)
    for kh in range(1, KH1):
        a1 = a1 + tap1(kh)                                    # clean dot chain
    a1 = jnp.maximum(a1 + b1_ref[...], 0.0)                   # (B*Ho1, L1p)

    # ---- conv2 + ReLU: two contiguous row-taps of a1.
    a1_3d = a1.reshape(B, Ho1, L1p)

    def tap2(kh):
        lhs = a1_3d[:, kh:kh + Ho2, :]
        return jnp.dot(lhs.reshape(B * Ho2, L1p), w2p_ref[kh],
                       preferred_element_type=jnp.float32)

    a2 = tap2(0)
    for kh in range(1, KH2):
        a2 = a2 + tap2(kh)
    a2 = jnp.maximum(a2 + b2_ref[...], 0.0)                   # (B*Ho2, L2p)

    # ---- dense1 + ReLU: the PyTorch NCDHW flatten is absorbed into w1d's row
    # permutation; contract the h2 axis as Ho2 row-taps, each a full-lane
    # (B, 128)x(128, 128) matmul (no 1-row pushes).
    a2_3d = a2.reshape(B, Ho2, L2p)
    h1 = jnp.dot(a2_3d[:, 0, :], w1d_ref[0],
                 preferred_element_type=jnp.float32)
    for r in range(1, Ho2):
        h1 = h1 + jnp.dot(a2_3d[:, r, :], w1d_ref[r],
                          preferred_element_type=jnp.float32)
    h1 = jnp.maximum(h1 + b1d_ref[...], 0.0)                  # (B, MIDp)

    # ---- dense2 + ReLU: full-lane unmasked store (real 32 lanes sliced outside).
    out = jnp.dot(h1, w2d_ref[...], preferred_element_type=jnp.float32)
    o_ref[...] = jnp.maximum(out + b2d_ref[...], 0.0).astype(o_ref.dtype)


def _fused_pallas_call(packed, dims, x_packed):
    B = x_packed.shape[0]
    kernel = functools.partial(_fused_kernel, dims=dict(dims, B=B))

    extra = {}
    if _CompilerParams is not None:
        try:
            # Let XLA fuse the tiny x repack into the pallas_call operand.
            extra["compiler_params"] = _CompilerParams(
                allow_input_fusion=[True] + [False] * 8)
        except TypeError:  # older parameter sets
            extra["compiler_params"] = _CompilerParams()

    # Single invocation (no grid): every operand (<1 MiB total) is resident in
    # VMEM once, no double-buffering, no per-batch step overhead.
    out = pl.pallas_call(
        kernel,
        out_shape=jax.ShapeDtypeStruct((B, dims["OUTp"]), jnp.float32),
        **extra,
    )(x_packed, packed["w1p"], packed["b1"], packed["w2p"], packed["b2"],
      packed["w1d"], packed["b1d"], packed["w2d"], packed["b2d"])
    return out


# ----------------------------- one-time weight packing ----------------------- #
def pack_params(params, map_size, time_steps):
    """Re-pack PyTorch-layout parameters into lane-padded, banded matrices.

    Done ONCE outside the jitted step:
      * conv weights -> per-kh banded matrices (block-diagonal over depth slices),
      * dense1 rows permuted so the NCDHW flatten order is absorbed,
      * Linear weights pre-transposed, biases pre-tiled,
      * every lane dimension zero-padded to a multiple of 128.
    """
    H = W = map_size
    C_in = time_steps
    Dd = _out_dim(time_steps, 1, 2)                       # conv1 output depth
    Ho1, Wo1 = _out_dim(H, 3, 2), _out_dim(W, 3, 2)       # conv1 output H/W
    Ho2, Wo2 = _out_dim(Ho1, 2, 1), _out_dim(Wo1, 2, 1)   # conv2 output H/W
    C1o = params["conv1_w"].shape[0]
    C1 = params["conv2_w"].shape[1]
    C2o = params["conv2_w"].shape[0]
    MID = params["dense1_w"].shape[0]
    OUT = params["dense2_w"].shape[0]

    L_in = Dd * W * C_in
    L1 = Dd * Wo1 * C1o
    L2 = Dd * Wo2 * C2o
    L_inp = _round_up(L_in, LANE)
    L1p = _round_up(L1, LANE)
    L2p = _round_up(L2, LANE)
    MIDp = _round_up(MID, LANE)
    OUTp = _round_up(OUT, LANE)

    w1 = np.asarray(params["conv1_w"], np.float32)        # (C1o, C_in, 1, 3, 3)
    w2 = np.asarray(params["conv2_w"], np.float32)        # (C2o, C1, 1, 2, 2)
    d1w = np.asarray(params["dense1_w"], np.float32)      # (MID, C2o*Dd*Ho2*Wo2)
    d2w = np.asarray(params["dense2_w"], np.float32)      # (OUT, MID)

    # conv1: W1P[kh][(dd,w,c),(dd,wo,co)] = w1[co,c,0,kh,w-2*wo]
    w1p_core = np.zeros((3, Dd, W, C_in, Dd, Wo1, C1o), np.float32)
    for kh in range(3):
        for dd in range(Dd):
            for wo in range(Wo1):
                for kw in range(3):
                    w1p_core[kh, dd, 2 * wo + kw, :, dd, wo, :] = w1[:, :, 0, kh, kw].T
    w1p = np.zeros((3, L_inp, L1p), np.float32)
    w1p[:, :L_in, :L1] = w1p_core.reshape(3, L_in, L1)
    b1 = np.zeros((1, L1p), np.float32)
    b1[0, :L1] = np.tile(np.asarray(params["conv1_b"], np.float32), Dd * Wo1)

    # conv2: W2P[kh][(dd,wv,c1),(dd,w2,co2)] = w2[co2,c1,0,kh,wv-w2]
    w2p_core = np.zeros((2, Dd, Wo1, C1, Dd, Wo2, C2o), np.float32)
    for kh in range(2):
        for dd in range(Dd):
            for w2o in range(Wo2):
                for kw in range(2):
                    w2p_core[kh, dd, w2o + kw, :, dd, w2o, :] = w2[:, :, 0, kh, kw].T
    w2p = np.zeros((2, L1p, L2p), np.float32)
    w2p[:, :L1, :L2] = w2p_core.reshape(2, L1, L2)
    b2 = np.zeros((1, L2p), np.float32)
    b2[0, :L2] = np.tile(np.asarray(params["conv2_b"], np.float32), Dd * Wo2)

    # dense1: absorb PyTorch flatten order (co2, dd, h2, w2); rows -> (h2,(dd,w2,co2))
    w1d_core = d1w.reshape(MID, C2o, Dd, Ho2, Wo2).transpose(3, 2, 4, 1, 0)
    w1d_core = np.ascontiguousarray(w1d_core).reshape(Ho2, L2, MID)
    w1d = np.zeros((Ho2, L2p, MIDp), np.float32)
    w1d[:, :L2, :MID] = w1d_core
    b1d = np.zeros((1, MIDp), np.float32)
    b1d[0, :MID] = np.asarray(params["dense1_b"], np.float32)

    # dense2
    w2d = np.zeros((MIDp, OUTp), np.float32)
    w2d[:MID, :OUT] = d2w.T
    b2d = np.zeros((1, OUTp), np.float32)
    b2d[0, :OUT] = np.asarray(params["dense2_b"], np.float32)

    packed = {k: jnp.asarray(v) for k, v in dict(
        w1p=w1p, b1=b1, w2p=w2p, b2=b2,
        w1d=w1d, b1d=b1d, w2d=w2d, b2d=b2d).items()}
    dims = dict(Hh=H // 2, Ho1=Ho1, Ho2=Ho2, KH1=3, KH2=2, Dd=Dd,
                L_in=L_in, L_inp=L_inp, L1p=L1p, L2p=L2p,
                MID=MID, MIDp=MIDp, OUT=OUT, OUTp=OUTp)
    return packed, dims


# ----------------------------- forward (jitted per step) --------------------- #
def inputspace_forward(packed, dims, states):
    """Equivalent of Inputspace.forward(states) for NCDHW float32 input."""
    B, C, D, H, W = states.shape
    Dd, Hh = dims["Dd"], dims["Hh"]
    x = states.astype(jnp.float32)
    # Keep only the even input depths used by conv1 (kd=1, depth stride 2), go
    # channels-last, and split H by parity so the kernel's stride-2 taps become
    # contiguous row slices.  Single tiny fused XLA copy; allow_input_fusion lets
    # XLA pull it into the pallas_call operand.
    xe = x[:, :, 0:2 * Dd:2, :, :]                    # (B, C, Dd, H, W)
    xt = jnp.transpose(xe, (0, 3, 2, 4, 1))           # (B, H, Dd, W, C)
    xt = xt.reshape(B, Hh, 2, Dd, W, C)               # h = 2*hh + parity
    xt = jnp.transpose(xt, (0, 2, 1, 3, 4, 5))        # (B, parity, hh, Dd, W, C)
    x_packed = xt.reshape(B, 2 * Hh, Dd * W * C)      # rows=(parity,hh), lanes=(dd,w,c)
    if dims["L_inp"] != dims["L_in"]:
        x_packed = jnp.pad(
            x_packed, ((0, 0), (0, 0), (0, dims["L_inp"] - dims["L_in"])))
    out = _fused_pallas_call(packed, dims, x_packed)
    return out[:, :dims["OUT"]]


# ----------------------------- reference & params ---------------------------- #
def reference_forward(params, states):
    """Pure-JAX/XLA reference of the PyTorch module (for correctness check)."""
    hi = lax.Precision.HIGHEST
    x = states.astype(jnp.float32)
    y = lax.conv_general_dilated(
        x, params["conv1_w"], (2, 2, 2), "VALID",
        dimension_numbers=("NCDHW", "OIDHW", "NCDHW"), precision=hi)
    y = jax.nn.relu(y + params["conv1_b"].reshape(1, -1, 1, 1, 1))
    y = lax.conv_general_dilated(
        y, params["conv2_w"], (1, 1, 1), "VALID",
        dimension_numbers=("NCDHW", "OIDHW", "NCDHW"), precision=hi)
    y = jax.nn.relu(y + params["conv2_b"].reshape(1, -1, 1, 1, 1))
    y = y.reshape(y.shape[0], -1)                     # PyTorch NCDHW flatten
    y = jax.nn.relu(jnp.dot(y, params["dense1_w"].T, precision=hi)
                    + params["dense1_b"])
    y = jax.nn.relu(jnp.dot(y, params["dense2_w"].T, precision=hi)
                    + params["dense2_b"])
    return y


def make_params(key, map_size, time_steps):
    """Deterministic synthetic parameters with the same shapes as the nn.Module."""
    d1 = _out_dim(time_steps, 1, 2)
    h1 = _out_dim(map_size, 3, 2)
    w1 = _out_dim(map_size, 3, 2)
    d2, h2, w2 = _out_dim(d1, 1, 1), _out_dim(h1, 2, 1), _out_dim(w1, 2, 1)
    in_features = d2 * h2 * w2 * 8
    mid_features, out_features = 64, 32

    ks = jax.random.split(key, 8)
    s = 0.05
    return {
        "conv1_w": s * jax.random.normal(ks[0], (4, time_steps, 1, 3, 3), jnp.float32),
        "conv1_b": s * jax.random.normal(ks[1], (4,), jnp.float32),
        "conv2_w": s * jax.random.normal(ks[2], (8, 4, 1, 2, 2), jnp.float32),
        "conv2_b": s * jax.random.normal(ks[3], (8,), jnp.float32),
        "dense1_w": s * jax.random.normal(ks[4], (mid_features, in_features), jnp.float32),
        "dense1_b": s * jax.random.normal(ks[5], (mid_features,), jnp.float32),
        "dense2_w": s * jax.random.normal(ks[6], (out_features, mid_features), jnp.float32),
        "dense2_b": s * jax.random.normal(ks[7], (out_features,), jnp.float32),
    }


if __name__ == "__main__":
    map_size, time_steps, batch = 16, 4, 2

    root = jax.random.PRNGKey(0)
    pkey, xkey = jax.random.split(root)
    params = make_params(pkey, map_size, time_steps)
    packed, dims = pack_params(params, map_size, time_steps)   # once, outside jit

    # NCDHW input: (batch, channels=time_steps, depth=time_steps, H, W)
    states = jax.random.normal(
        xkey, (batch, time_steps, time_steps, map_size, map_size), jnp.float32)

    fwd = jax.jit(lambda p, s: inputspace_forward(p, dims, s))
    out = fwd(packed, states)
    jax.block_until_ready(out)

    ref = reference_forward(params, states)
    err = float(jnp.max(jnp.abs(out - ref)))

    assert out.shape == (batch, 32), out.shape
    assert out.dtype == jnp.float32
    assert err < 1e-3, f"max abs err vs reference: {err}"
    print("KERNEL_OK")
</pallas_src>

<mosaic_0001>
module attributes {stable_mosaic.version = 11 : i64} {
  func.func @_fused_kernel(%arg0: memref<2x16x128xf32, #tpu.memory_space<vmem>>, %arg1: memref<3x128x128xf32, #tpu.memory_space<vmem>>, %arg2: memref<1x128xf32, #tpu.memory_space<vmem>>, %arg3: memref<2x128x128xf32, #tpu.memory_space<vmem>>, %arg4: memref<1x128xf32, #tpu.memory_space<vmem>>, %arg5: memref<6x128x128xf32, #tpu.memory_space<vmem>>, %arg6: memref<1x128xf32, #tpu.memory_space<vmem>>, %arg7: memref<128x128xf32, #tpu.memory_space<vmem>>, %arg8: memref<1x128xf32, #tpu.memory_space<vmem>>, %arg9: memref<2x128xf32, #tpu.memory_space<vmem>>) attributes {dimension_semantics = [], scalar_prefetch = 0 : i64, scratch_operands = 0 : i64, tpu.core_type = #tpu.core_type<tc>} {
    %c0 = arith.constant 0 : index
    %c0_0 = arith.constant 0 : index
    %c0_1 = arith.constant 0 : index
    %0 = vector.load %arg0[%c0, %c0_0, %c0_1] : memref<2x16x128xf32, #tpu.memory_space<vmem>>, vector<2x16x128xf32>
    %1 = vector.extract_strided_slice %0 {offsets = [0, 0, 0], sizes = [2, 7, 128], strides = [1, 1, 1]} : vector<2x16x128xf32> to vector<2x7x128xf32>
    %2 = vector.shape_cast %1 : vector<2x7x128xf32> to vector<14x128xf32>
    %c0_2 = arith.constant 0 : index
    %c0_3 = arith.constant 0 : index
    %c0_4 = arith.constant 0 : index
    %3 = vector.load %arg1[%c0_2, %c0_3, %c0_4] : memref<3x128x128xf32, #tpu.memory_space<vmem>>, vector<1x128x128xf32>
    %4 = vector.shape_cast %3 : vector<1x128x128xf32> to vector<128x128xf32>
    %cst = arith.constant dense<0.000000e+00> : vector<14x128xf32>
    %5 = tpu.matmul %2, %4, %cst {dimension_numbers = #tpu.dot_dimension_numbers<[1], [0], [0], [1], [0, 0, 1, 1], [], []>} : vector<14x128xf32>, vector<128x128xf32>, vector<14x128xf32> -> vector<14x128xf32>
    %6 = vector.extract_strided_slice %0 {offsets = [0, 8, 0], sizes = [2, 7, 128], strides = [1, 1, 1]} : vector<2x16x128xf32> to vector<2x7x128xf32>
    %7 = vector.shape_cast %6 : vector<2x7x128xf32> to vector<14x128xf32>
    %c1 = arith.constant 1 : index
    %c0_5 = arith.constant 0 : index
    %c0_6 = arith.constant 0 : index
    %8 = vector.load %arg1[%c1, %c0_5, %c0_6] : memref<3x128x128xf32, #tpu.memory_space<vmem>>, vector<1x128x128xf32>
    %9 = vector.shape_cast %8 : vector<1x128x128xf32> to vector<128x128xf32>
    %cst_7 = arith.constant dense<0.000000e+00> : vector<14x128xf32>
    %10 = tpu.matmul %7, %9, %cst_7 {dimension_numbers = #tpu.dot_dimension_numbers<[1], [0], [0], [1], [0, 0, 1, 1], [], []>} : vector<14x128xf32>, vector<128x128xf32>, vector<14x128xf32> -> vector<14x128xf32>
    %11 = arith.addf %5, %10 : vector<14x128xf32>
    %12 = vector.extract_strided_slice %0 {offsets = [0, 1, 0], sizes = [2, 7, 128], strides = [1, 1, 1]} : vector<2x16x128xf32> to vector<2x7x128xf32>
    %13 = vector.shape_cast %12 : vector<2x7x128xf32> to vector<14x128xf32>
    %c2 = arith.constant 2 : index
    %c0_8 = arith.constant 0 : index
    %c0_9 = arith.constant 0 : index
    %14 = vector.load %arg1[%c2, %c0_8, %c0_9] : memref<3x128x128xf32, #tpu.memory_space<vmem>>, vector<1x128x128xf32>
    %15 = vector.shape_cast %14 : vector<1x128x128xf32> to vector<128x128xf32>
    %cst_10 = arith.constant dense<0.000000e+00> : vector<14x128xf32>
    %16 = tpu.matmul %13, %15, %cst_10 {dimension_numbers = #tpu.dot_dimension_numbers<[1], [0], [0], [1], [0, 0, 1, 1], [], []>} : vector<14x128xf32>, vector<128x128xf32>, vector<14x128xf32> -> vector<14x128xf32>
    %17 = arith.addf %11, %16 : vector<14x128xf32>
    %c0_11 = arith.constant 0 : index
    %c0_12 = arith.constant 0 : index
    %18 = vector.load %arg2[%c0_11, %c0_12] : memref<1x128xf32, #tpu.memory_space<vmem>>, vector<1x128xf32>
    %19 = vector.broadcast %18 : vector<1x128xf32> to vector<14x128xf32>
    %20 = arith.addf %17, %19 : vector<14x128xf32>
    %cst_13 = arith.constant 0.000000e+00 : f32
    %21 = vector.broadcast %cst_13 : f32 to vector<14x128xf32>
    %22 = arith.maximumf %20, %21 : vector<14x128xf32>
    %23 = vector.shape_cast %22 : vector<14x128xf32> to vector<2x7x128xf32>
    %24 = vector.extract_strided_slice %23 {offsets = [0, 0, 0], sizes = [2, 6, 128], strides = [1, 1, 1]} : vector<2x7x128xf32> to vector<2x6x128xf32>
    %25 = vector.shape_cast %24 : vector<2x6x128xf32> to vector<12x128xf32>
    %c0_14 = arith.constant 0 : index
    %c0_15 = arith.constant 0 : index
    %c0_16 = arith.constant 0 : index
    %26 = vector.load %arg3[%c0_14, %c0_15, %c0_16] : memref<2x128x128xf32, #tpu.memory_space<vmem>>, vector<1x128x128xf32>
    %27 = vector.shape_cast %26 : vector<1x128x128xf32> to vector<128x128xf32>
    %cst_17 = arith.constant dense<0.000000e+00> : vector<12x128xf32>
    %28 = tpu.matmul %25, %27, %cst_17 {dimension_numbers = #tpu.dot_dimension_numbers<[1], [0], [0], [1], [0, 0, 1, 1], [], []>} : vector<12x128xf32>, vector<128x128xf32>, vector<12x128xf32> -> vector<12x128xf32>
    %29 = vector.extract_strided_slice %23 {offsets = [0, 1, 0], sizes = [2, 6, 128], strides = [1, 1, 1]} : vector<2x7x128xf32> to vector<2x6x128xf32>
    %30 = vector.shape_cast %29 : vector<2x6x128xf32> to vector<12x128xf32>
    %c1_18 = arith.constant 1 : index
    %c0_19 = arith.constant 0 : index
    %c0_20 = arith.constant 0 : index
    %31 = vector.load %arg3[%c1_18, %c0_19, %c0_20] : memref<2x128x128xf32, #tpu.memory_space<vmem>>, vector<1x128x128xf32>
    %32 = vector.shape_cast %31 : vector<1x128x128xf32> to vector<128x128xf32>
    %cst_21 = arith.constant dense<0.000000e+00> : vector<12x128xf32>
    %33 = tpu.matmul %30, %32, %cst_21 {dimension_numbers = #tpu.dot_dimension_numbers<[1], [0], [0], [1], [0, 0, 1, 1], [], []>} : vector<12x128xf32>, vector<128x128xf32>, vector<12x128xf32> -> vector<12x128xf32>
    %34 = arith.addf %28, %33 : vector<12x128xf32>
    %c0_22 = arith.constant 0 : index
    %c0_23 = arith.constant 0 : index
    %35 = vector.load %arg4[%c0_22, %c0_23] : memref<1x128xf32, #tpu.memory_space<vmem>>, vector<1x128xf32>
    %36 = vector.broadcast %35 : vector<1x128xf32> to vector<12x128xf32>
    %37 = arith.addf %34, %36 : vector<12x128xf32>
    %cst_24 = arith.constant 0.000000e+00 : f32
    %38 = vector.broadcast %cst_24 : f32 to vector<12x128xf32>
    %39 = arith.maximumf %37, %38 : vector<12x128xf32>
    %40 = vector.shape_cast %39 : vector<12x128xf32> to vector<2x6x128xf32>
    %41 = vector.extract_strided_slice %40 {offsets = [0, 0, 0], sizes = [2, 1, 128], strides = [1, 1, 1]} : vector<2x6x128xf32> to vector<2x1x128xf32>
    %42 = vector.shape_cast %41 : vector<2x1x128xf32> to vector<2x128xf32>
    %c0_25 = arith.constant 0 : index
    %c0_26 = arith.constant 0 : index
    %c0_27 = arith.constant 0 : index
    %43 = vector.load %arg5[%c0_25, %c0_26, %c0_27] : memref<6x128x128xf32, #tpu.memory_space<vmem>>, vector<1x128x128xf32>
    %44 = vector.shape_cast %43 : vector<1x128x128xf32> to vector<128x128xf32>
    %cst_28 = arith.constant dense<0.000000e+00> : vector<2x128xf32>
    %45 = tpu.matmul %42, %44, %cst_28 {dimension_numbers = #tpu.dot_dimension_numbers<[1], [0], [0], [1], [0, 0, 1, 1], [], []>} : vector<2x128xf32>, vector<128x128xf32>, vector<2x128xf32> -> vector<2x128xf32>
    %46 = vector.extract_strided_slice %40 {offsets = [0, 1, 0], sizes = [2, 1, 128], strides = [1, 1, 1]} : vector<2x6x128xf32> to vector<2x1x128xf32>
    %47 = vector.shape_cast %46 : vector<2x1x128xf32> to vector<2x128xf32>
    %c1_29 = arith.constant 1 : index
    %c0_30 = arith.constant 0 : index
    %c0_31 = arith.constant 0 : index
    %48 = vector.load %arg5[%c1_29, %c0_30, %c0_31] : memref<6x128x128xf32, #tpu.memory_space<vmem>>, vector<1x128x128xf32>
    %49 = vector.shape_cast %48 : vector<1x128x128xf32> to vector<128x128xf32>
    %cst_32 = arith.constant dense<0.000000e+00> : vector<2x128xf32>
    %50 = tpu.matmul %47, %49, %cst_32 {dimension_numbers = #tpu.dot_dimension_numbers<[1], [0], [0], [1], [0, 0, 1, 1], [], []>} : vector<2x128xf32>, vector<128x128xf32>, vector<2x128xf32> -> vector<2x128xf32>
    %51 = arith.addf %45, %50 : vector<2x128xf32>
    %52 = vector.extract_strided_slice %40 {offsets = [0, 2, 0], sizes = [2, 1, 128], strides = [1, 1, 1]} : vector<2x6x128xf32> to vector<2x1x128xf32>
    %53 = vector.shape_cast %52 : vector<2x1x128xf32> to vector<2x128xf32>
    %c2_33 = arith.constant 2 : index
    %c0_34 = arith.constant 0 : index
    %c0_35 = arith.constant 0 : index
    %54 = vector.load %arg5[%c2_33, %c0_34, %c0_35] : memref<6x128x128xf32, #tpu.memory_space<vmem>>, vector<1x128x128xf32>
    %55 = vector.shape_cast %54 : vector<1x128x128xf32> to vector<128x128xf32>
    %cst_36 = arith.constant dense<0.000000e+00> : vector<2x128xf32>
    %56 = tpu.matmul %53, %55, %cst_36 {dimension_numbers = #tpu.dot_dimension_numbers<[1], [0], [0], [1], [0, 0, 1, 1], [], []>} : vector<2x128xf32>, vector<128x128xf32>, vector<2x128xf32> -> vector<2x128xf32>
    %57 = arith.addf %51, %56 : vector<2x128xf32>
    %58 = vector.extract_strided_slice %40 {offsets = [0, 3, 0], sizes = [2, 1, 128], strides = [1, 1, 1]} : vector<2x6x128xf32> to vector<2x1x128xf32>
    %59 = vector.shape_cast %58 : vector<2x1x128xf32> to vector<2x128xf32>
    %c3 = arith.constant 3 : index
    %c0_37 = arith.constant 0 : index
    %c0_38 = arith.constant 0 : index
    %60 = vector.load %arg5[%c3, %c0_37, %c0_38] : memref<6x128x128xf32, #tpu.memory_space<vmem>>, vector<1x128x128xf32>
    %61 = vector.shape_cast %60 : vector<1x128x128xf32> to vector<128x128xf32>
    %cst_39 = arith.constant dense<0.000000e+00> : vector<2x128xf32>
    %62 = tpu.matmul %59, %61, %cst_39 {dimension_numbers = #tpu.dot_dimension_numbers<[1], [0], [0], [1], [0, 0, 1, 1], [], []>} : vector<2x128xf32>, vector<128x128xf32>, vector<2x128xf32> -> vector<2x128xf32>
    %63 = arith.addf %57, %62 : vector<2x128xf32>
    %64 = vector.extract_strided_slice %40 {offsets = [0, 4, 0], sizes = [2, 1, 128], strides = [1, 1, 1]} : vector<2x6x128xf32> to vector<2x1x128xf32>
    %65 = vector.shape_cast %64 : vector<2x1x128xf32> to vector<2x128xf32>
    %c4 = arith.constant 4 : index
    %c0_40 = arith.constant 0 : index
    %c0_41 = arith.constant 0 : index
    %66 = vector.load %arg5[%c4, %c0_40, %c0_41] : memref<6x128x128xf32, #tpu.memory_space<vmem>>, vector<1x128x128xf32>
    %67 = vector.shape_cast %66 : vector<1x128x128xf32> to vector<128x128xf32>
    %cst_42 = arith.constant dense<0.000000e+00> : vector<2x128xf32>
    %68 = tpu.matmul %65, %67, %cst_42 {dimension_numbers = #tpu.dot_dimension_numbers<[1], [0], [0], [1], [0, 0, 1, 1], [], []>} : vector<2x128xf32>, vector<128x128xf32>, vector<2x128xf32> -> vector<2x128xf32>
    %69 = arith.addf %63, %68 : vector<2x128xf32>
    %70 = vector.extract_strided_slice %40 {offsets = [0, 5, 0], sizes = [2, 1, 128], strides = [1, 1, 1]} : vector<2x6x128xf32> to vector<2x1x128xf32>
    %71 = vector.shape_cast %70 : vector<2x1x128xf32> to vector<2x128xf32>
    %c5 = arith.constant 5 : index
    %c0_43 = arith.constant 0 : index
    %c0_44 = arith.constant 0 : index
    %72 = vector.load %arg5[%c5, %c0_43, %c0_44] : memref<6x128x128xf32, #tpu.memory_space<vmem>>, vector<1x128x128xf32>
    %73 = vector.shape_cast %72 : vector<1x128x128xf32> to vector<128x128xf32>
    %cst_45 = arith.constant dense<0.000000e+00> : vector<2x128xf32>
    %74 = tpu.matmul %71, %73, %cst_45 {dimension_numbers = #tpu.dot_dimension_numbers<[1], [0], [0], [1], [0, 0, 1, 1], [], []>} : vector<2x128xf32>, vector<128x128xf32>, vector<2x128xf32> -> vector<2x128xf32>
    %75 = arith.addf %69, %74 : vector<2x128xf32>
    %c0_46 = arith.constant 0 : index
    %c0_47 = arith.constant 0 : index
    %76 = vector.load %arg6[%c0_46, %c0_47] : memref<1x128xf32, #tpu.memory_space<vmem>>, vector<1x128xf32>
    %77 = vector.broadcast %76 : vector<1x128xf32> to vector<2x128xf32>
    %78 = arith.addf %75, %77 : vector<2x128xf32>
    %cst_48 = arith.constant 0.000000e+00 : f32
    %79 = vector.broadcast %cst_48 : f32 to vector<2x128xf32>
    %80 = arith.maximumf %78, %79 : vector<2x128xf32>
    %c0_49 = arith.constant 0 : index
    %c0_50 = arith.constant 0 : index
    %81 = vector.load %arg7[%c0_49, %c0_50] : memref<128x128xf32, #tpu.memory_space<vmem>>, vector<128x128xf32>
    %cst_51 = arith.constant dense<0.000000e+00> : vector<2x128xf32>
    %82 = tpu.matmul %80, %81, %cst_51 {dimension_numbers = #tpu.dot_dimension_numbers<[1], [0], [0], [1], [0, 0, 1, 1], [], []>} : vector<2x128xf32>, vector<128x128xf32>, vector<2x128xf32> -> vector<2x128xf32>
    %c0_52 = arith.constant 0 : index
    %c0_53 = arith.constant 0 : index
    %83 = vector.load %arg8[%c0_52, %c0_53] : memref<1x128xf32, #tpu.memory_space<vmem>>, vector<1x128xf32>
    %84 = vector.broadcast %83 : vector<1x128xf32> to vector<2x128xf32>
    %85 = arith.addf %82, %84 : vector<2x128xf32>
    %cst_54 = arith.constant 0.000000e+00 : f32
    %86 = vector.broadcast %cst_54 : f32 to vector<2x128xf32>
    %87 = arith.maximumf %85, %86 : vector<2x128xf32>
    %c0_55 = arith.constant 0 : index
    %c0_56 = arith.constant 0 : index
    %88 = vector.load %arg9[%c0_55, %c0_56] : memref<2x128xf32, #tpu.memory_space<vmem>>, vector<2x128xf32>
    tpu.vector_store %arg9[%c0_55, %c0_56], %87 {strides = array<i32>} : memref<2x128xf32, #tpu.memory_space<vmem>>, vector<2x128xf32>,
    return
  }
}

</mosaic_0001>

<bundles_post_ra>
// kernel: _lambda_.1
= control target key start
LH: loop header
LB: loop body
LE: loop exit
PB: predicated region body
PF: predicated region fallthrough
CT: control target
= control target key end

     0   :  { %v43_v3 = vlaneseq  ;;  %v3104_v6 = vmov 1966171168   ;;  %s4041_s0 = inlined_call_operand.vmem [shape: f32[2,16,128], index: 0, kind: input, shape index: {}]   ;;  %s4042_s1 = inlined_call_operand.vmem [shape: f32[3,128,128], index: 1, kind: input, shape index: {}]   ;;  %s4043_s2 = inlined_call_operand.vmem [shape: f32[1,128], index: 2, kind: input, shape index: {}]   ;;  %s4044_s3 = inlined_call_operand.vmem [shape: f32[2,128,128], index: 3, kind: input, shape index: {}]   ;;  %s4045_s4 = inlined_call_operand.vmem [shape: f32[1,128], index: 4, kind: input, shape index: {}]   ;;  %s4046_s5 = inlined_call_operand.vmem [shape: f32[6,128,128], index: 5, kind: input, shape index: {}]   ;;  %s4047_s6 = inlined_call_operand.vmem [shape: f32[1,128], index: 6, kind: input, shape index: {}]   ;;  %s4048_s7 = inlined_call_operand.vmem [shape: f32[128,128], index: 7, kind: input, shape index: {}]   ;;  %s4049_s8 = inlined_call_operand.vmem [shape: f32[1,128], index: 8, kind: input, shape index: {}]   ;;  %s4050_s9 = inlined_call_operand.hbm [shape: f32[2,128], index: 9, kind: output, shape index: {}]  }
   0x1   :  { %v1969_v0 = vld [vmem:[%s4042_s1 + $0x80] sm:$0xff]  ;;  %v1970_v1 = vld [vmem:[%s4042_s1 + $0x88] sm:$0xff]  ;;  %v1971_v2 = vld [vmem:[%s4042_s1 + $0x90] sm:$0xff]  ;;  %v41_v7 = vunpack.c.l.s4 %v3104_v6 }
   0x2   :  { %v2736_v4 = vpack.c.bf16 %v1970_v1, %v1969_v0  ;;  %v1972_v5 = vld [vmem:[%s4042_s1 + $0x98] sm:$0xff]  ;;  %v1973_v9 = vld [vmem:[%s4042_s1 + $0xa0] sm:$0xff]  ;;  %v1974_v10 = vld [vmem:[%s4042_s1 + $0xa8] sm:$0xff]  ;;  %v3178_v11 = vshrl.u32 %v43_v3, 7 }
   0x3   :  { %v2740_v8 = vpack.c.bf16 %v1972_v5, %v1971_v2  ;;  %v42_v12 = vunpack.c.0.s8 %v41_v7  ;;  %v1975_v13 = vld [vmem:[%s4042_s1 + $0xb0] sm:$0xff]  ;;  %v2744_v14 = vpack.c.bf16 %v1974_v10, %v1973_v9  ;;  %v1976_v15 = vld [vmem:[%s4042_s1 + $0xb8] sm:$0xff]  ;;  %v34_v16 = vld [vmem:[%s4041_s0 + $0x8] sm:$0xff] }
   0x4   :  { %2737 = vmatprep.subr.bf16.mxu0 %v2736_v4  ;;  %v36_v17 = vld [vmem:[%s4041_s0 + $0x18] sm:$0xff]  ;;  %v153_v19 = vcombine.high %v34_v16, %v34_v16  ;;  %v2748_v23 = vpack.c.bf16 %v1976_v15, %v1975_v13  ;;  %v1977_v30 = vld [vmem:[%s4042_s1 + $0xc0] sm:$0xff]  ;;  %v1978_v31 = vld [vmem:[%s4042_s1 + $0xc8] sm:$0xff] }
   0x5   :  { %2739 = vmatpush3.bf16.msra.mxu0 %v2736_v4  ;;  %v3193_v18 = vsub.s32 %v42_v12, %v3178_v11  ;;  %v201_v20 = vcombine.high %v36_v17, %v36_v17  ;;  %v2752_v41 = vpack.c.bf16 %v1978_v31, %v1977_v30  ;;  %v1979_v45 = vld [vmem:[%s4042_s1 + $0xd0] sm:$0xff]  ;;  %v1980_v46 = vld [vmem:[%s4042_s1 + $0xd8] sm:$0xff]  ;;  %v33_v55 = vld [vmem:[%s4041_s0] sm:$0xff] }
   0x6   :  { %2741 = vmatprep.subr.bf16.mxu0 %v2740_v8  ;;  %v3229_v58 = vld [vmem:[%s4041_s0 + $0x10] sm:$0xff]  ;;  %v2756_v59 = vpack.c.bf16 %v1980_v46, %v1979_v45  ;;  %v1981_v61 = vld [vmem:[%s4042_s1 + $0xe0] sm:$0xff]  ;;  %v1982_v62 = vld [vmem:[%s4042_s1 + $0xe8] sm:$0xff]  ;;  %v39_v1 = vcombine.high %v33_v55, %v33_v55 }
   0x7   :  { %v160_v21 = vrot.slane %v34_v16, %v3193_v18  ;;  %v208_v22 = vrot.slane %v36_v17, %v3193_v18  ;;  %v167_v24 = vrot.slane %v153_v19, %v3193_v18  ;;  %v215_v25 = vrot.slane %v201_v20, %v3193_v18 }
   0x8   :  { %v46_v2 = vrot.slane %v33_v55, %v3193_v18 }
   0x9   :  { %2743 = vmatpush3.bf16.msra.mxu0 %v2740_v8  ;;  %v168_v26 = vcombine.high %v160_v21, %v160_v21  ;;  %v176_v27 = vrot.slane %v160_v21, %v3193_v18  ;;  %v216_v28 = vcombine.high %v208_v22, %v208_v22  ;;  %v224_v29 = vrot.slane %v208_v22, %v3193_v18 }
   0xa   :  { %2745 = vmatprep.subr.bf16.mxu0 %v2744_v14  ;;  %v169_v32 = vcombine.high %v167_v24, %v167_v24  ;;  %v183_v33 = vrot.slane %v167_v24, %v3193_v18  ;;  %v217_v34 = vcombine.high %v215_v25, %v215_v25  ;;  %v231_v35 = vrot.slane %v215_v25, %v3193_v18 }
   0xb   :  { %v190_v36 = vrot.slane %v168_v26, %v3193_v18  ;;  %v246_v37 = vcombine.high %v224_v29, %v224_v29  ;;  %v238_v38 = vrot.slane %v216_v28, %v3193_v18 }
   0xc   :  { %v197_v39 = vrot.slane %v169_v32, %v3193_v18  ;;  %v199_v40 = vcombine.high %v183_v33, %v183_v33  ;;  %v245_v49 = vrot.slane %v217_v34, %v3193_v18  ;;  %v247_v50 = vcombine.high %v231_v35, %v231_v35 }
   0xd   :  { %2747 = vmatpush3.bf16.msra.mxu0 %v2744_v14  ;;  %v266_v42 = vcombine.low %v176_v27, %v190_v36  ;;  %v1985_v43 = vcombine.high %v176_v27, %v190_v36  ;;  %v248_v44 = vcombine.high %v238_v38, %v238_v38  ;;  %v315_v53 = vcombine.low %v238_v38, %v246_v37 }
   0xe   :  { %2749 = vmatprep.subr.bf16.mxu0 %v2748_v23  ;;  %v268_v47 = vcombine.low %v183_v33, %v197_v39  ;;  %v269_v48 = vcombine.low %v199_v40, %v224_v29  ;;  %v317_v0 = vcombine.low %v245_v49, %v247_v50 }
   0xf   :  { %v276_v51 = vrot.slane %v266_v42, %v3193_v18  ;;  %v283_v52 = vrot.slane %v1985_v43, %v3193_v18  ;;  %v316_v54 = vcombine.low %v248_v44, %v231_v35 }
  0x10   :  { %v290_v56 = vrot.slane %v268_v47, %v3193_v18  ;;  %v297_v57 = vrot.slane %v269_v48, %v3193_v18 }
  0x11   :  { %2751 = vmatpush3.bf16.msra.mxu0 %v2748_v23  ;;  %v298_v60 = vcombine.low %v276_v51, %v283_v52 }
  0x12   :  { %2753 = vmatprep.subr.bf16.mxu0 %v2752_v41  ;;  %v299_v63 = vcombine.low %v290_v56, %v297_v57 }
  0x13   :  { %14 = vsyncpa [#allocation3], 0  ;;  %v306_v3 = vrot.slane %v298_v60, %v3193_v18  ;;  %v324_v4 = vrot.slane %v315_v53, %v3193_v18  ;;  %v331_v5 = vrot.slane %v316_v54, %v3193_v18  ;;  %v3243_v6 = vrot.slane %v3229_v58, %v3193_v18  ;;  %v1983_v14 = vld [vmem:[%s4042_s1 + $0xf0] sm:$0xff]  ;;  %v1984_v15 = vld [vmem:[%s4042_s1 + $0xf8] sm:$0xff]  ;;  %s3109_s18 = smov [#allocation2]  }
  0x14   :  { %v313_v7 = vrot.slane %v299_v63, %v3193_v18  ;;  %v53_v8 = vrot.slane %v39_v1, %v3193_v18  ;;  %v54_v9 = vcombine.high %v46_v2, %v46_v2  ;;  %v3248_v10 = vrot.slane %v46_v2, %v3193_v18  ;;  %v135_v28 = vld [vmem:[%s4042_s1] sm:$0xff]  ;;  %v136_v29 = vld [vmem:[%s4042_s1 + $0x8] sm:$0xff]  ;;  %v137_v40 = vld [vmem:[%s4042_s1 + $0x10] sm:$0xff]  ;;  %s1961_s19 = sshll.u32 %s3109_s18, 4  ;;  %s1962_s19 = int_to_ptr.vmem [resolvable:$true] %s1961_s19 }
  0x15   :  { %2755 = vmatpush3.bf16.msra.mxu0 %v2752_v41  ;;  %v2760_v12 = vpack.c.bf16 %v1982_v62, %v1981_v61  ;;  %v3252_v13 = vrot.slane %v3243_v6, %v3193_v18  ;;  %v338_v21 = vrot.slane %v317_v0, %v3193_v18  ;;  %v339_v22 = vcombine.low %v324_v4, %v331_v5  ;;  %v138_v41 = vld [vmem:[%s4042_s1 + $0x18] sm:$0xff]  ;;  %v139_v47 = vld [vmem:[%s4042_s1 + $0x20] sm:$0xff]  ;;  %v140_v48 = vld [vmem:[%s4042_s1 + $0x28] sm:$0xff]  ;;  %s3080_s20 = scalar_lea.vmem %s1962_s19, 32  ;;  %p3085_p1 = scmp.lt.s32.totalorder %s1962_s19, %s1962_s19 }
  0x16   :  { %2757 = vmatprep.subr.bf16.mxu0 %v2756_v59  ;;  %v314_v16 = vcombine.low %v306_v3, %v313_v7  ;;  %v55_v17 = vcombine.high %v53_v8, %v53_v8  ;;  %v3261_v19 = vrot.slane %v53_v8, %v3193_v18  ;;  %v3264_v20 = vrot.slane %v54_v9, %v3193_v18  ;;  %v2006_v50 = vld [vmem:[%s4044_s3 + $0x80] sm:$0xff]  ;;  %v2007_v51 = vld [vmem:[%s4044_s3 + $0x88] sm:$0xff]  ;;  %v2008_v54 = vld [vmem:[%s4044_s3 + $0x90] sm:$0xff]  ;;  %p3081_p0 = scmp.ne.s32.totalorder %s1962_s19, %s3080_s20  ;;  %p3086_p2 = scmp.lt.s32.totalorder %s3080_s20, %s3080_s20 }
  0x17   :  { %v2764_v26 = vpack.c.bf16 %v1984_v15, %v1983_v14  ;;  %v346_v33 = vrot.slane %v339_v22, %v3193_v18  ;;  %v353_v34 = vrot.slane %v338_v21, %v3193_v18  ;;  %v2768_v38 = vpack.c.bf16 %v136_v29, %v135_v28  ;;  %v2009_v55 = vld [vmem:[%s4044_s3 + $0x98] sm:$0xff]  ;;  %v143_v0 = vld [vmem:[%s4042_s1 + $0x40] sm:$0xff]  ;;  %v144_v1 = vld [vmem:[%s4042_s1 + $0x48] sm:$0xff] }
  0x18   :  { %2348 = vmatprep.mubr.f32.mxu0 %v314_v16  ;;  %v3268_v23 = vrot.slane %v55_v17, %v3193_v18  ;;  %v3272_v24 = vcombine.high %v3261_v19, %v3261_v19  ;;  %v432_v25 = vcombine.low %v3248_v10, %v3264_v20  ;;  %v1986_v27 = vcombine.high %v3248_v10, %v3264_v20  ;;  %v146_v14 = vld [vmem:[%s4042_s1 + $0x58] sm:$0xff]  ;;  %v147_v28 = vld [vmem:[%s4042_s1 + $0x60] sm:$0xff]  ;;  %v148_v29 = vld [vmem:[%s4042_s1 + $0x68] sm:$0xff]  ;;  %p3087_p3 = por %p3086_p2, %p3085_p1 }
  0x19   :  { %2759 = vmatpush3.bf16.msra.mxu0 %v2756_v59  ;;  %v354_v43 = vcombine.low %v346_v33, %v353_v34  ;;  %v2772_v46 = vpack.c.bf16 %v138_v41, %v137_v40  ;;  %v87_v52 = vcombine.high %v3229_v58, %v3229_v58  ;;  %v102_v53 = vcombine.high %v3243_v6, %v3243_v6  ;;  %v141_v58 = vld [vmem:[%s4042_s1 + $0x30] sm:$0xff]  ;;  %v142_v59 = vld [vmem:[%s4042_s1 + $0x38] sm:$0xff]  ;;  %v1987_v41 = vld [vmem:[%s4042_s1 + $0x100] sm:$0xff] }
  0x1a   :  { %2761 = vmatprep.subr.bf16.mxu0 %v2760_v12  ;;  %v434_v30 = vcombine.low %v3261_v19, %v3268_v23  ;;  %v435_v31 = vcombine.low %v3272_v24, %v3252_v13  ;;  %v442_v32 = vrot.slane %v432_v25, %v3193_v18  ;;  %v449_v35 = vrot.slane %v1986_v27, %v3193_v18  ;;  %v149_v34 = vld [vmem:[%s4042_s1 + $0x70] sm:$0xff]  ;;  %p3088_p4 = pnand %p3087_p3, %p3081_p0 }
  0x1b   :  { %v2776_v56 = vpack.c.bf16 %v140_v48, %v139_v47  ;;  %v2832_v57 = vpack.c.bf16 %v2007_v51, %v2006_v50  ;;  %v2836_v60 = vpack.c.bf16 %v2009_v55, %v2008_v54  ;;  %v3331_v61 = vrot.slane %v102_v53, %v3193_v18  ;;  %v1989_v48 = vld [vmem:[%s4042_s1 + $0x110] sm:$0xff]  ;;  %v1991_v53 = vld [vmem:[%s4042_s1 + $0x120] sm:$0xff]  ;;  %v1992_v54 = vld [vmem:[%s4042_s1 + $0x128] sm:$0xff] }
  0x1c   :  { %v456_v36 = vrot.slane %v434_v30, %v3193_v18  ;;  %v463_v37 = vrot.slane %v435_v31, %v3193_v18  ;;  %v464_v39 = vcombine.low %v442_v32, %v449_v35  ;;  %v101_v62 = vrot.slane %v87_v52, %v3193_v18  ;;  %v150_v35 = vld [vmem:[%s4042_s1 + $0x78] sm:$0xff] }
  0x1d   :  { %2763 = vmatpush3.bf16.msra.mxu0 %v2760_v12  ;;  %2833 = vmatprep.subr.bf16.mxu1 %v2832_v57  ;;  %v2780_v63 = vpack.c.bf16 %v142_v59, %v141_v58  ;;  %v132_v4 = vcombine.high %v3252_v13, %v3252_v13  ;;  %v134_v5 = vcombine.high %v3331_v61, %v3331_v61  ;;  %v145_v12 = vld [vmem:[%s4042_s1 + $0x50] sm:$0xff]  ;;  %v1995_v59 = vld [vmem:[%s4042_s1 + $0x140] sm:$0xff]  ;;  %vm3106_vm0 = vmmov 0  }
  0x1e   :  { %2765 = vmatprep.subr.bf16.mxu0 %v2764_v26  ;;  %v465_v42 = vcombine.low %v456_v36, %v463_v37  ;;  %v472_v44 = vrot.slane %v464_v39, %v3193_v18  ;;  %2835 = vmatpush3.bf16.msra.mxu1 %v2832_v57  ;;  %v103_v2 = vcombine.high %v101_v62, %v101_v62  ;;  %v1994_v57 = vld [vmem:[%s4042_s1 + $0x138] sm:$0xff]  ;;  %vm1306_vm1 = vcmask 1041409  }
  0x1f   :  { %2837 = vmatprep.subr.bf16.mxu1 %v2836_v60  ;;  %v3341_v3 = vrot.slane %v101_v62, %v3193_v18  ;;  %v84_v6 = vcombine.high %v3248_v10, %v3248_v10  ;;  %v86_v7 = vcombine.high %v3264_v20, %v3264_v20  ;;  %v598_v8 = vcombine.high %v3268_v23, %v3268_v23 }
  0x20   :  { %v479_v45 = vrot.slane %v465_v42, %v3193_v18  ;;  %v2784_v9 = vpack.c.bf16 %v144_v1, %v143_v0  ;;  %v3360_v15 = vrot.slane %v103_v2, %v3193_v18  ;;  %v481_v16 = vcombine.low %v3331_v61, %v132_v4  ;;  %v1988_v42 = vld [vmem:[%s4042_s1 + $0x108] sm:$0xff]  ;;  %v1998_v0 = vld [vmem:[%s4042_s1 + $0x158] sm:$0xff] }
  0x21   :  { %2767 = vmatpush3.bf16.msra.mxu0 %v2764_v26  ;;  %v133_v10 = vcombine.high %v3341_v3, %v3341_v3  ;;  %v482_v17 = vcombine.low %v134_v5, %v3341_v3  ;;  %v617_v21 = vcombine.low %v3264_v20, %v84_v6  ;;  %v618_v22 = vcombine.low %v86_v7, %v3261_v19  ;;  %v1999_v5 = vld [vmem:[%s4042_s1 + $0x160] sm:$0xff]  ;;  %v2000_v6 = vld [vmem:[%s4042_s1 + $0x168] sm:$0xff] }
  0x22   :  { %2769 = vmatprep.subr.bf16.mxu0 %v2768_v38  ;;  %v480_v49 = vcombine.low %v472_v44, %v479_v45  ;;  %2839 = vmatpush3.bf16.msra.mxu1 %v2836_v60  ;;  %v619_v25 = vcombine.low %v3268_v23, %v3272_v24  ;;  %v620_v26 = vcombine.low %v598_v8, %v3331_v61  ;;  %v1996_v60 = vld [vmem:[%s4042_s1 + $0x148] sm:$0xff] }
  0x23   :  { %v2788_v27 = vpack.c.bf16 %v146_v14, %v145_v12  ;;  %v483_v30 = vcombine.low %v3360_v15, %v133_v10  ;;  %v490_v20 = vrot.slane %v481_v16, %v3193_v18  ;;  %v497_v19 = vrot.slane %v482_v17, %v3193_v18  ;;  %v2002_v12 = vld [vmem:[%s4042_s1 + $0x178] sm:$0xff] }
  0x24   :  { %2349 = vmatmul.mubr.f32.vlgmr.msra.gmra.mrb[0].mxu0 %v354_v43  ;;  %v627_v23 = vrot.slane %v617_v21, %v3193_v18  ;;  %v634_v24 = vrot.slane %v618_v22, %v3193_v18  ;;  %v641_v31 = vrot.slane %v619_v25, %v3193_v18  ;;  %v648_v32 = vrot.slane %v620_v26, %v3193_v18  ;;  %v2010_v21 = vld [vmem:[%s4044_s3 + $0xa0] sm:$0xff]  ;;  %v2011_v22 = vld [vmem:[%s4044_s3 + $0xa8] sm:$0xff]  ;;  %v2012_v26 = vld [vmem:[%s4044_s3 + $0xb0] sm:$0xff] }
  0x25   :  { %2771 = vmatpush3.bf16.msra.mxu0 %v2768_v38  ;;  %2383 = vmatprep.mubr.f32.mxu0 %v480_v49  ;;  %v2792_v33 = vpack.c.bf16 %v148_v29, %v147_v28  ;;  %v504_v36 = vrot.slane %v483_v30, %v3193_v18  ;;  %v505_v37 = vcombine.low %v490_v20, %v497_v19  ;;  %v1990_v49 = vld [vmem:[%s4042_s1 + $0x118] sm:$0xff]  ;;  %v2014_v29 = vld [vmem:[%s4044_s3 + $0xc0] sm:$0xff]  ;;  %v2015_v30 = vld [vmem:[%s4044_s3 + $0xc8] sm:$0xff] }
  0x26   :  { %2773 = vmatprep.subr.bf16.mxu0 %v2772_v46  ;;  %v649_v38 = vcombine.low %v627_v23, %v634_v24  ;;  %v650_v39 = vcombine.low %v641_v31, %v648_v32  ;;  %v2796_v40 = vpack.c.bf16 %v150_v35, %v149_v34  ;;  %v2800_v47 = vpack.c.bf16 %v1988_v42, %v1987_v41  ;;  %v2016_v19 = vld [vmem:[%s4044_s3 + $0xd0] sm:$0xff]  ;;  %v2017_v23 = vld [vmem:[%s4044_s3 + $0xd8] sm:$0xff]  ;;  %v2018_v31 = vld [vmem:[%s4044_s3 + $0xe0] sm:$0xff] }
  0x27   :  { %v512_v43 = vrot.slane %v505_v37, %v3193_v18  ;;  %v519_v44 = vrot.slane %v504_v36, %v3193_v18  ;;  %v2804_v52 = vpack.c.bf16 %v1990_v49, %v1989_v48  ;;  %v2808_v55 = vpack.c.bf16 %v1992_v54, %v1991_v53  ;;  %v2019_v32 = vld [vmem:[%s4044_s3 + $0xe8] sm:$0xff]  ;;  %v2020_v34 = vld [vmem:[%s4044_s3 + $0xf0] sm:$0xff]  ;;  %v2021_v35 = vld [vmem:[%s4044_s3 + $0xf8] sm:$0xff] }
  0x28   :  { %v657_v45 = vrot.slane %v649_v38, %v3193_v18  ;;  %v2816_v62 = vpack.c.bf16 %v1996_v60, %v1995_v59  ;;  %v2003_v1 = vcombine.high %v3252_v13, %v3331_v61  ;;  %v667_v2 = vcombine.low %v3341_v3, %v3360_v15  ;;  %v894_v37 = vld [vmem:[%s4044_s3] sm:$0xff]  ;;  %v895_v38 = vld [vmem:[%s4044_s3 + $0x8] sm:$0xff] }
  0x29   :  { %2775 = vmatpush3.bf16.msra.mxu0 %v2772_v46  ;;  %v664_v46 = vrot.slane %v650_v39, %v3193_v18  ;;  %v520_v50 = vcombine.low %v512_v43, %v519_v44  ;;  %v2004_v7 = vcombine.high %v3341_v3, %v3360_v15  ;;  %v2824_v61 = vpack.c.bf16 %v2000_v6, %v1999_v5  ;;  %v1265_v41 = vld [vmem:[%s4046_s5] sm:$0xff]  ;;  %v1266_v42 = vld [vmem:[%s4046_s5 + $0x8] sm:$0xff]  ;;  %v1267_v44 = vld [vmem:[%s4046_s5 + $0x10] sm:$0xff] }
  0x2a   :  { %2777 = vmatprep.subr.bf16.mxu0 %v2776_v56  ;;  %v675_v8 = vrot.slane %v2003_v1, %v3193_v18  ;;  %v682_v13 = vrot.slane %v667_v2, %v3193_v18  ;;  %v2840_v25 = vpack.c.bf16 %v2011_v22, %v2010_v21  ;;  %v2848_v20 = vpack.c.bf16 %v2015_v30, %v2014_v29  ;;  %v1270_v48 = vld [vmem:[%s4046_s5 + $0x28] sm:$0xff]  ;;  %v1273_v53 = vld [vmem:[%s4046_s5 + $0x40] sm:$0xff] }
  0x2b   :  { %v665_v51 = vcombine.low %v657_v45, %v664_v46  ;;  %v689_v14 = vrot.slane %v2004_v7, %v3193_v18  ;;  %v2852_v24 = vpack.c.bf16 %v2017_v23, %v2016_v19  ;;  %v2860_v36 = vpack.c.bf16 %v2021_v35, %v2020_v34  ;;  %v1268_v45 = vld [vmem:[%s4046_s5 + $0x18] sm:$0xff]  ;;  %v1274_v54 = vld [vmem:[%s4046_s5 + $0x48] sm:$0xff] }
  0x2c   :  { %v690_v10 = vcombine.low %v675_v8, %v682_v13  ;;  %2841 = vmatprep.subr.bf16.mxu1 %v2840_v25  ;;  %v3496_v39 = vpack.c.bf16 %v895_v38, %v894_v37  ;;  %v2921_v43 = vpack.c.bf16 %v1266_v42, %v1265_v41  ;;  %v2924_v46 = vpack.c.bf16 %v1268_v45, %v1267_v44 }
  0x2d   :  { %2779 = vmatpush3.bf16.msra.mxu0 %v2776_v56  ;;  %v1993_v56 = vld [vmem:[%s4042_s1 + $0x130] sm:$0xff]  ;;  %v704_v16 = vrot.slane %v689_v14, %v3193_v18  ;;  %2843 = vmatpush3.bf16.msra.mxu1 %v2840_v25 }
  0x2e   :  { %2781 = vmatprep.subr.bf16.mxu0 %v2780_v63  ;;  %v2812_v58 = vpack.c.bf16 %v1994_v57, %v1993_v56  ;;  %v697_v15 = vrot.slane %v690_v10, %v3193_v18  ;;  %v2005_v56 = vld [vmem:[%s4043_s2] ss:$0 sm:$0xff] }
  0x30   :  { %v705_v17 = vcombine.low %v697_v15, %v704_v16 }
  0x31   :  { %2783 = vmatpush3.bf16.msra.mxu0 %v2780_v63  ;;  %v1997_v63 = vld [vmem:[%s4042_s1 + $0x150] sm:$0xff] }
  0x32   :  { %2785 = vmatprep.subr.bf16.mxu0 %v2784_v9  ;;  %v2820_v4 = vpack.c.bf16 %v1998_v0, %v1997_v63 }
  0x35   :  { %2787 = vmatpush3.bf16.msra.mxu0 %v2784_v9  ;;  %v2001_v9 = vld [vmem:[%s4042_s1 + $0x170] sm:$0xff] }
  0x36   :  { %2789 = vmatprep.subr.bf16.mxu0 %v2788_v27  ;;  %v2828_v3 = vpack.c.bf16 %v2002_v12, %v2001_v9 }
  0x39   :  { %2791 = vmatpush3.bf16.msra.mxu0 %v2788_v27  ;;  %v2013_v27 = vld [vmem:[%s4044_s3 + $0xb8] sm:$0xff] }
  0x3a   :  { %2793 = vmatprep.subr.bf16.mxu0 %v2792_v33  ;;  %v2844_v28 = vpack.c.bf16 %v2013_v27, %v2012_v26 }
  0x3c   :  { %2845 = vmatprep.subr.bf16.mxu1 %v2844_v28 }
  0x3d   :  { %2795 = vmatpush3.bf16.msra.mxu0 %v2792_v33  ;;  %2847 = vmatpush3.bf16.msra.mxu1 %v2844_v28  ;;  %v2856_v33 = vpack.c.bf16 %v2019_v32, %v2018_v31 }
  0x3e   :  { %2797 = vmatprep.subr.bf16.mxu0 %v2796_v40  ;;  %2849 = vmatprep.subr.bf16.mxu1 %v2848_v20 }
  0x41   :  { %2799 = vmatpush3.bf16.msra.mxu0 %v2796_v40  ;;  %2851 = vmatpush3.bf16.msra.mxu1 %v2848_v20  ;;  %v3105_v40 = vmov 0.0|0.0  }
  0x42   :  { %2801 = vmatprep.subr.bf16.mxu0 %v2800_v47  ;;  %2853 = vmatprep.subr.bf16.mxu1 %v2852_v24 }
  0x44   :  { %2384 = vmatmul.mubr.f32.vlgmr.msra.gmra.mrb[0].mxu0 %v520_v50  ;;  %v1271_v50 = vld [vmem:[%s4046_s5 + $0x30] sm:$0xff] }
  0x45   :  { %2803 = vmatpush3.bf16.msra.mxu0 %v2800_v47  ;;  %2418 = vmatprep.mubr.f32.mxu0 %v665_v51  ;;  %v1269_v47 = vld [vmem:[%s4046_s5 + $0x20] sm:$0xff]  ;;  %v1272_v51 = vld [vmem:[%s4046_s5 + $0x38] sm:$0xff] }
  0x46   :  { %2805 = vmatprep.subr.bf16.mxu0 %v2804_v52  ;;  %2855 = vmatpush3.bf16.msra.mxu1 %v2852_v24  ;;  %v2927_v49 = vpack.c.bf16 %v1270_v48, %v1269_v47 }
  0x47   :  { %2857 = vmatprep.subr.bf16.mxu1 %v2856_v33 }
  0x49   :  { %2807 = vmatpush3.bf16.msra.mxu0 %v2804_v52  ;;  %v2930_v52 = vpack.c.bf16 %v1272_v51, %v1271_v50 }
  0x4a   :  { %2809 = vmatprep.subr.bf16.mxu0 %v2808_v55  ;;  %2859 = vmatpush3.bf16.msra.mxu1 %v2856_v33 }
  0x4b   :  { %2861 = vmatprep.subr.bf16.mxu1 %v2860_v36 }
  0x4d   :  { %2811 = vmatpush3.bf16.msra.mxu0 %v2808_v55  ;;  %v2933_v55 = vpack.c.bf16 %v1274_v54, %v1273_v53  ;;  %v897_v53 = vld [vmem:[%s4044_s3 + $0x18] sm:$0xff] }
  0x4e   :  { %2813 = vmatprep.subr.bf16.mxu0 %v2812_v58  ;;  %2863 = vmatpush3.bf16.msra.mxu1 %v2860_v36 }
  0x4f   :  { %2865 = vmatprep.subr.bf16.mxu1 %v3496_v39 }
  0x51   :  { %2815 = vmatpush3.bf16.msra.mxu0 %v2812_v58 }
  0x52   :  { %2817 = vmatprep.subr.bf16.mxu0 %v2816_v62 }
  0x55   :  { %2819 = vmatpush3.bf16.msra.mxu0 %v2816_v62 }
  0x56   :  { %2821 = vmatprep.subr.bf16.mxu0 %v2820_v4 }
  0x59   :  { %2823 = vmatpush3.bf16.msra.mxu0 %v2820_v4 }
  0x5a   :  { %2825 = vmatprep.subr.bf16.mxu0 %v2824_v61 }
  0x5d   :  { %2827 = vmatpush3.bf16.msra.mxu0 %v2824_v61 }
  0x5e   :  { %2829 = vmatprep.subr.bf16.mxu0 %v2828_v3 }
  0x61   :  { %2831 = vmatpush3.bf16.msra.mxu0 %v2828_v3 }
  0x62   :  { %2920 = vmatprep.subr.bf16.mxu0 %v3105_v40 }
  0x64   :  { %2419 = vmatmul.mubr.f32.vlgmr.msra.gmra.mrb[0].mxu0 %v705_v17 }
  0x65   :  { %2922 = vmatpush3.bf16.msra.mxu0 %v2921_v43 }
  0x66   :  { %2923 = vmatprep.subr.bf16.mxu0 %v3105_v40 }
  0x69   :  { %2925 = vmatpush3.bf16.msra.mxu0 %v2924_v46 }
  0x6a   :  { %2926 = vmatprep.subr.bf16.mxu0 %v3105_v40 }
  0x6d   :  { %2928 = vmatpush3.bf16.msra.mxu0 %v2927_v49 }
  0x6e   :  { %2929 = vmatprep.subr.bf16.mxu0 %v3105_v40 }
  0x71   :  { %2931 = vmatpush3.bf16.msra.mxu0 %v2930_v52  ;;  %v896_v52 = vld [vmem:[%s4044_s3 + $0x10] sm:$0xff] }
  0x72   :  { %2932 = vmatprep.subr.bf16.mxu0 %v3105_v40 }
  0x75   :  { %2934 = vmatpush3.bf16.msra.mxu0 %v2933_v55 }
  0x76   :  { %2935 = vmatprep.subr.bf16.mxu0 %v3105_v40 }
 0x137   :  { %v2420_v57 = vpop.f32.mrb[0].mxu0 }
 0x138   :  { %v793_v58 = vadd.f32 %v2420_v57, %v2005_v56  ;;  %v774_v59 = vpop.f32.mrb[1].mxu0 }
 0x139   :  { %v792_v60 = vadd.f32 %v2005_v56, %v774_v59  ;;  %v2868_v59 = vpack.c.bf16 %v897_v53, %v896_v52  ;;  %v2040_v52 = vld [vmem:[%s4046_s5 + $0xf8] sm:$0xff]  ;;  %v1279_v53 = vld [vmem:[%s4046_s5 + $0x70] sm:$0xff] }
 0x13a   :  { %v795_v62 = vmax.f32 %v793_v58, 0.0 }
 0x13b   :  { %v794_v63 = vmax.f32 %v792_v60, 0.0  ;;  %v898_v60 = vld [vmem:[%s4044_s3 + $0x20] sm:$0xff] }
 0x13c   :  { %v847_v0 = vcombine.high %v795_v62, %v795_v62  ;;  %v854_v1 = vrot.slane %v795_v62, %v3193_v18  ;;  %v899_v62 = vld [vmem:[%s4044_s3 + $0x28] sm:$0xff] }
 0x13d   :  { %v798_v2 = vcombine.high %v794_v63, %v794_v63  ;;  %v805_v4 = vrot.slane %v794_v63, %v3193_v18  ;;  %v2872_v63 = vpack.c.bf16 %v899_v62, %v898_v60  ;;  %v2024_v62 = vld [vmem:[%s4045_s4] ss:$0 sm:$0xff] }
 0x13e   :  { %v861_v5 = vrot.slane %v847_v0, %v3193_v18  ;;  %v862_v6 = vcombine.high %v854_v1, %v854_v1  ;;  %v3544_v9 = vrot.slane %v854_v1, %v3193_v18  ;;  %v900_v0 = vld [vmem:[%s4044_s3 + $0x30] sm:$0xff]  ;;  %v901_v1 = vld [vmem:[%s4044_s3 + $0x38] sm:$0xff] }
 0x13f   :  { %v812_v7 = vrot.slane %v798_v2, %v3193_v18  ;;  %v813_v8 = vcombine.high %v805_v4, %v805_v4  ;;  %v821_v13 = vrot.slane %v805_v4, %v3193_v18  ;;  %v2876_v2 = vpack.c.bf16 %v901_v1, %v900_v0  ;;  %v902_v4 = vld [vmem:[%s4044_s3 + $0x40] sm:$0xff] }
 0x140   :  { %v863_v61 = vcombine.high %v861_v5, %v861_v5  ;;  %v3547_v12 = vrot.slane %v862_v6, %v3193_v18  ;;  %v3552_v16 = vrot.slane %v861_v5, %v3193_v18  ;;  %v904_v6 = vld [vmem:[%s4044_s3 + $0x50] sm:$0xff] }
 0x141   :  { %v814_v14 = vcombine.high %v812_v7, %v812_v7  ;;  %v828_v10 = vrot.slane %v812_v7, %v3193_v18  ;;  %v835_v3 = vrot.slane %v813_v8, %v3193_v18  ;;  %v843_v15 = vcombine.high %v821_v13, %v821_v13  ;;  %v905_v7 = vld [vmem:[%s4044_s3 + $0x58] sm:$0xff] }
 0x142   :  { %v891_v17 = vrot.slane %v863_v61, %v3193_v18  ;;  %v930_v21 = vcombine.low %v3544_v9, %v3547_v12  ;;  %v2022_v24 = vcombine.high %v3544_v9, %v3547_v12  ;;  %v893_v8 = vcombine.high %v3547_v12, %v3547_v12  ;;  %v906_v61 = vld [vmem:[%s4044_s3 + $0x60] sm:$0xff] }
 0x143   :  { %v842_v22 = vrot.slane %v814_v14, %v3193_v18  ;;  %v1077_v25 = vcombine.low %v821_v13, %v835_v3  ;;  %v844_v26 = vcombine.high %v828_v10, %v828_v10  ;;  %v2023_v28 = vcombine.high %v821_v13, %v835_v3  ;;  %v907_v14 = vld [vmem:[%s4044_s3 + $0x68] sm:$0xff] }
 0x144   :  { %v977_v27 = vcombine.low %v3552_v16, %v891_v17  ;;  %v845_v29 = vcombine.high %v835_v3, %v835_v3  ;;  %v927_v30 = vcombine.low %v835_v3, %v843_v15  ;;  %v958_v32 = vrot.slane %v930_v21, %v3193_v18  ;;  %v908_v17 = vld [vmem:[%s4044_s3 + $0x70] sm:$0xff]  ;;  %v909_v21 = vld [vmem:[%s4044_s3 + $0x78] sm:$0xff] }
 0x145   :  { %v846_v20 = vcombine.high %v842_v22, %v842_v22  ;;  %v1079_v19 = vcombine.low %v828_v10, %v842_v22  ;;  %v929_v23 = vcombine.low %v842_v22, %v844_v26  ;;  %v1087_v36 = vrot.slane %v1077_v25, %v3193_v18 }
 0x146   :  { %v928_v31 = vcombine.low %v845_v29, %v828_v10  ;;  %v991_v34 = vrot.slane %v977_v27, %v3193_v18  ;;  %v937_v37 = vrot.slane %v927_v30, %v3193_v18  ;;  %v1094_v41 = vrot.slane %v2023_v28, %v3193_v18  ;;  %v2025_v27 = vld [vmem:[%s4046_s5 + $0x80] sm:$0xff]  ;;  %v2026_v28 = vld [vmem:[%s4046_s5 + $0x88] sm:$0xff]  ;;  %v2027_v30 = vld [vmem:[%s4046_s5 + $0x90] sm:$0xff] }
 0x147   :  { %v951_v33 = vrot.slane %v929_v23, %v3193_v18  ;;  %v1080_v35 = vcombine.low %v846_v20, %v3544_v9  ;;  %v984_v43 = vrot.slane %v2022_v24, %v3193_v18  ;;  %v1101_v44 = vrot.slane %v1079_v19, %v3193_v18  ;;  %v2028_v20 = vld [vmem:[%s4046_s5 + $0x98] sm:$0xff]  ;;  %v2029_v23 = vld [vmem:[%s4046_s5 + $0xa0] sm:$0xff] }
 0x148   :  { %v944_v38 = vrot.slane %v928_v31, %v3193_v18  ;;  %v1109_v47 = vcombine.low %v1087_v36, %v1094_v41  ;;  %v2884_v13 = vpack.c.bf16 %v905_v7, %v904_v6  ;;  %v892_v10 = vcombine.high %v3544_v9, %v3544_v9  ;;  %v2031_v31 = vld [vmem:[%s4046_s5 + $0xb0] sm:$0xff] }
 0x149   :  { %v960_v42 = vcombine.low %v951_v33, %v958_v32  ;;  %v1108_v45 = vrot.slane %v1080_v35, %v3193_v18  ;;  %v992_v49 = vcombine.low %v984_v43, %v991_v34  ;;  %v1127_v3 = vcombine.low %v893_v8, %v3552_v16  ;;  %v2032_v32 = vld [vmem:[%s4046_s5 + $0xb8] sm:$0xff]  ;;  %v2033_v34 = vld [vmem:[%s4046_s5 + $0xc0] sm:$0xff]  ;;  %v2034_v35 = vld [vmem:[%s4046_s5 + $0xc8] sm:$0xff] }
 0x14a   :  { %v959_v46 = vcombine.low %v937_v37, %v944_v38  ;;  %v1117_v54 = vrot.slane %v1109_v47, %v3193_v18  ;;  %v2888_v15 = vpack.c.bf16 %v907_v14, %v906_v61  ;;  %v1126_v22 = vcombine.low %v3547_v12, %v892_v10  ;;  %v2035_v37 = vld [vmem:[%s4046_s5 + $0xd0] sm:$0xff]  ;;  %v2036_v38 = vld [vmem:[%s4046_s5 + $0xd8] sm:$0xff]  ;;  %v1277_v47 = vld [vmem:[%s4046_s5 + $0x60] sm:$0xff] }
 0x14b   :  { %v974_v48 = vrot.slane %v960_v42, %v3193_v18  ;;  %v1110_v50 = vcombine.low %v1101_v44, %v1108_v45  ;;  %v999_v57 = vrot.slane %v992_v49, %v3193_v18  ;;  %v1141_v25 = vrot.slane %v1127_v3, %v3193_v18  ;;  %v1275_v41 = vld [vmem:[%s4046_s5 + $0x50] sm:$0xff]  ;;  %v1276_v43 = vld [vmem:[%s4046_s5 + $0x58] sm:$0xff]  ;;  %v2037_v45 = vld [vmem:[%s4046_s5 + $0xe0] sm:$0xff] }
 0x14c   :  { %v967_v51 = vrot.slane %v959_v46, %v3193_v18  ;;  %v2892_v9 = vpack.c.bf16 %v909_v21, %v908_v17  ;;  %v1134_v26 = vrot.slane %v1126_v22, %v3193_v18  ;;  %v2897_v12 = vpack.c.bf16 %v2026_v28, %v2025_v27  ;;  %v2038_v46 = vld [vmem:[%s4046_s5 + $0xe8] sm:$0xff]  ;;  %v2057_v22 = vld [vmem:[%s4046_s5 + $0x180] sm:$0xff] }
 0x14d   :  { %v1124_v55 = vrot.slane %v1110_v50, %v3193_v18  ;;  %v2900_v19 = vpack.c.bf16 %v2028_v20, %v2027_v30  ;;  %v2906_v33 = vpack.c.bf16 %v2032_v32, %v2031_v31  ;;  %v2909_v36 = vpack.c.bf16 %v2034_v35, %v2033_v34  ;;  %v1278_v49 = vld [vmem:[%s4046_s5 + $0x68] sm:$0xff]  ;;  %v2043_v31 = vld [vmem:[%s4046_s5 + $0x110] sm:$0xff]  ;;  %v2044_v34 = vld [vmem:[%s4046_s5 + $0x118] sm:$0xff] }
 0x14e   :  { %v975_v56 = vcombine.low %v967_v51, %v974_v48  ;;  %v1142_v16 = vcombine.low %v1134_v26, %v1141_v25  ;;  %v2912_v42 = vpack.c.bf16 %v2036_v38, %v2035_v37  ;;  %v2936_v44 = vpack.c.bf16 %v1276_v43, %v1275_v41  ;;  %v2039_v51 = vld [vmem:[%s4046_s5 + $0xf0] sm:$0xff]  ;;  %v2042_v61 = vld [vmem:[%s4046_s5 + $0x108] sm:$0xff] }
 0x14f   :  { %v1125_v58 = vcombine.low %v1117_v54, %v1124_v55  ;;  %v2915_v48 = vpack.c.bf16 %v2038_v46, %v2037_v45  ;;  %v2939_v50 = vpack.c.bf16 %v1278_v49, %v1277_v47  ;;  %v2918_v54 = vpack.c.bf16 %v2040_v52, %v2039_v51  ;;  %v1280_v55 = vld [vmem:[%s4046_s5 + $0x78] sm:$0xff]  ;;  %v2059_v35 = vld [vmem:[%s4046_s5 + $0x190] sm:$0xff]  ;;  %v2045_v45 = vld [vmem:[%s4046_s5 + $0x120] sm:$0xff] }
 0x150   :  { %2453 = vmatprep.mubr.f32.mxu1 %v975_v56  ;;  %v1149_v29 = vrot.slane %v1142_v16, %v3193_v18  ;;  %v2030_v18 = vld [vmem:[%s4046_s5 + $0xa8] sm:$0xff]  ;;  %2937 = vmatpush3.bf16.msra.mxu0 %v2936_v44  ;;  %v3107_v56 = vmov 0.0   ;;  %v1300_v7 = vsub.s32 1, %v3178_v11  ;;  %v1381_v8 = vsub.s32 0, %v3178_v11  ;;  %v2061_v47 = vld [vmem:[%s4046_s5 + $0x1a0] sm:$0xff]  ;;  %v2047_v51 = vld [vmem:[%s4046_s5 + $0x130] sm:$0xff] }
 0x151   :  { %2454 = vmatmul.mubr.f32.vlgmr.msra.gmra.mrb[0].mxu1 %v999_v57  ;;  %v2903_v24 = vpack.c.bf16 %v2030_v18, %v2029_v23  ;;  %2938 = vmatprep.subr.bf16.mxu0 %v3105_v40  ;;  %v2942_v57 = vpack.c.bf16 %v1280_v55, %v1279_v53  ;;  %v2948_v43 = vpack.c.bf16 %v2044_v34, %v2043_v31  ;;  %v2046_v46 = vld [vmem:[%s4046_s5 + $0x128] sm:$0xff]  ;;  %v2048_v52 = vld [vmem:[%s4046_s5 + $0x138] sm:$0xff]  ;;  %v2063_v53 = vld [vmem:[%s4046_s5 + $0x1b0] sm:$0xff] }
 0x152   :  { %2867 = vmatpush3.bf16.msra.mxu1 %v3496_v39  ;;  %2488 = vmatprep.mubr.f32.mxu1 %v1125_v58  ;;  %v903_v39 = vld [vmem:[%s4044_s3 + $0x48] sm:$0xff]  ;;  %v3108_v58 = vmov 1983009808   ;;  %v2951_v49 = vpack.c.bf16 %v2046_v46, %v2045_v45  ;;  %v2954_v55 = vpack.c.bf16 %v2048_v52, %v2047_v51  ;;  %v2093_v31 = vld [vmem:[%s4046_s5 + $0x2a0] sm:$0xff]  ;;  %v2083_v51 = vld [vmem:[%s4046_s5 + $0x250] sm:$0xff] }
 0x153   :  { %2869 = vmatprep.subr.bf16.mxu1 %v2868_v59  ;;  %v2880_v5 = vpack.c.bf16 %v903_v39, %v902_v4  ;;  %2558 = vmatprep.mubr.msk.f32.mxu0 %vm3106_vm0, %v3107_v56  ;;  %v2081_v45 = vld [vmem:[%s4046_s5 + $0x240] sm:$0xff]  ;;  %v2082_v46 = vld [vmem:[%s4046_s5 + $0x248] sm:$0xff]  ;;  %v2084_v52 = vld [vmem:[%s4046_s5 + $0x258] sm:$0xff] }
 0x154   :  { %2940 = vmatpush3.bf16.msra.mxu0 %v2939_v50 }
 0x155   :  { %2941 = vmatprep.subr.bf16.mxu0 %v3105_v40 }
 0x156   :  { %2871 = vmatpush3.bf16.msra.mxu1 %v2868_v59  ;;  %v1242_v59 = vunpack.c.l.s4 %v3108_v58  ;;  %v2049_v58 = vld [vmem:[%s4046_s5 + $0x140] sm:$0xff] }
 0x157   :  { %2873 = vmatprep.subr.bf16.mxu1 %v2872_v63 }
 0x158   :  { %2943 = vmatpush3.bf16.msra.mxu0 %v2942_v57  ;;  %v1243_v60 = vunpack.c.0.s8 %v1242_v59  ;;  %v2050_v59 = vld [vmem:[%s4046_s5 + $0x148] sm:$0xff] }
 0x159   :  { %2968 = vmatprep.subr.bf16.mxu0 %v3105_v40 }
 0x15a   :  { %2875 = vmatpush3.bf16.msra.mxu1 %v2872_v63  ;;  %v1246_v1 = vsub.s32 %v1243_v60, %v3178_v11  ;;  %v2058_v11 = vld [vmem:[%s4046_s5 + $0x188] sm:$0xff]  ;;  %v2065_v60 = vld [vmem:[%s4046_s5 + $0x1c0] sm:$0xff] }
 0x15b   :  { %2877 = vmatprep.subr.bf16.mxu1 %v2876_v2 }
 0x15e   :  { %2879 = vmatpush3.bf16.msra.mxu1 %v2876_v2 }
 0x15f   :  { %2881 = vmatprep.subr.bf16.mxu1 %v2880_v5 }
 0x162   :  { %2883 = vmatpush3.bf16.msra.mxu1 %v2880_v5 }
 0x163   :  { %2885 = vmatprep.subr.bf16.mxu1 %v2884_v13 }
 0x166   :  { %2887 = vmatpush3.bf16.msra.mxu1 %v2884_v13  ;;  %v2041_v13 = vld [vmem:[%s4046_s5 + $0x100] sm:$0xff] }
 0x167   :  { %2889 = vmatprep.subr.bf16.mxu1 %v2888_v15  ;;  %v2945_v21 = vpack.c.bf16 %v2042_v61, %v2041_v13  ;;  %v2069_v13 = vld [vmem:[%s4046_s5 + $0x1e0] sm:$0xff]  ;;  %v2070_v61 = vld [vmem:[%s4046_s5 + $0x1e8] sm:$0xff] }
 0x16a   :  { %2891 = vmatpush3.bf16.msra.mxu1 %v2888_v15 }
 0x16b   :  { %2893 = vmatprep.subr.bf16.mxu1 %v2892_v9 }
 0x16e   :  { %2895 = vmatpush3.bf16.msra.mxu1 %v2892_v9 }
 0x16f   :  { %2896 = vmatprep.subr.bf16.mxu1 %v3105_v40 }
 0x171   :  { %2489 = vmatmul.mubr.f32.vlgmr.msra.gmra.mrb[0].mxu1 %v1149_v29 }
 0x172   :  { %2898 = vmatpush3.bf16.msra.mxu1 %v2897_v12  ;;  %2523 = vmatprep.mubr.msk.f32.mxu1 %vm3106_vm0, %v3107_v56 }
 0x173   :  { %2899 = vmatprep.subr.bf16.mxu1 %v3105_v40 }
 0x176   :  { %2901 = vmatpush3.bf16.msra.mxu1 %v2900_v19  ;;  %v2969_v19 = vpack.c.bf16 %v2058_v11, %v2057_v22 }
 0x177   :  { %2902 = vmatprep.subr.bf16.mxu1 %v3105_v40 }
 0x17a   :  { %2904 = vmatpush3.bf16.msra.mxu1 %v2903_v24 }
 0x17b   :  { %2905 = vmatprep.subr.bf16.mxu1 %v3105_v40 }
 0x17e   :  { %2907 = vmatpush3.bf16.msra.mxu1 %v2906_v33 }
 0x17f   :  { %2908 = vmatprep.subr.bf16.mxu1 %v3105_v40 }
 0x182   :  { %2910 = vmatpush3.bf16.msra.mxu1 %v2909_v36  ;;  %v2060_v36 = vld [vmem:[%s4046_s5 + $0x198] sm:$0xff] }
 0x183   :  { %2911 = vmatprep.subr.bf16.mxu1 %v3105_v40  ;;  %v2972_v44 = vpack.c.bf16 %v2060_v36, %v2059_v35  ;;  %v2079_v35 = vld [vmem:[%s4046_s5 + $0x230] sm:$0xff]  ;;  %v2080_v36 = vld [vmem:[%s4046_s5 + $0x238] sm:$0xff] }
 0x186   :  { %2913 = vmatpush3.bf16.msra.mxu1 %v2912_v42 }
 0x187   :  { %2914 = vmatprep.subr.bf16.mxu1 %v3105_v40 }
 0x18a   :  { %2916 = vmatpush3.bf16.msra.mxu1 %v2915_v48  ;;  %v2062_v48 = vld [vmem:[%s4046_s5 + $0x1a8] sm:$0xff] }
 0x18b   :  { %2917 = vmatprep.subr.bf16.mxu1 %v3105_v40  ;;  %v2975_v50 = vpack.c.bf16 %v2062_v48, %v2061_v47  ;;  %v2097_v47 = vld [vmem:[%s4046_s5 + $0x2c0] sm:$0xff]  ;;  %v2098_v48 = vld [vmem:[%s4046_s5 + $0x2c8] sm:$0xff] }
 0x18e   :  { %2919 = vmatpush3.bf16.msra.mxu1 %v2918_v54  ;;  %v2064_v54 = vld [vmem:[%s4046_s5 + $0x1b8] sm:$0xff] }
 0x18f   :  { %2944 = vmatprep.subr.bf16.mxu1 %v3105_v40  ;;  %v2978_v57 = vpack.c.bf16 %v2064_v54, %v2063_v53  ;;  %v2099_v53 = vld [vmem:[%s4046_s5 + $0x2d0] sm:$0xff]  ;;  %v2100_v54 = vld [vmem:[%s4046_s5 + $0x2d8] sm:$0xff] }
 0x244   :  { %v2490_v63 = vpop.f32.mrb[0].mxu1 }
 0x245   :  { %v1235_v0 = vadd.f32 %v2490_v63, %v2024_v62  ;;  %v1218_v2 = vpop.f32.mrb[1].mxu1  ;;  %v2957_v63 = vpack.c.bf16 %v2050_v59, %v2049_v58  ;;  %v2085_v58 = vld [vmem:[%s4046_s5 + $0x260] sm:$0xff]  ;;  %v2086_v59 = vld [vmem:[%s4046_s5 + $0x268] sm:$0xff] }
 0x246   :  { %v1234_v4 = vadd.f32 %v2024_v62, %v1218_v2  ;;  %v2066_v62 = vld [vmem:[%s4046_s5 + $0x1c8] sm:$0xff]  ;;  %v2052_v2 = vld [vmem:[%s4046_s5 + $0x158] sm:$0xff] }
 0x247   :  { %v1237_v39 = vmax.f32 %v1235_v0, 0.0  ;;  %v2981_v0 = vpack.c.bf16 %v2066_v62, %v2065_v60  ;;  %v2101_v60 = vld [vmem:[%s4046_s5 + $0x2e0] sm:$0xff]  ;;  %v2102_v62 = vld [vmem:[%s4046_s5 + $0x2e8] sm:$0xff] }
 0x248   :  { %v1236_v5 = vmax.f32 %v1234_v4, 0.0  ;;  %v2067_v4 = vld [vmem:[%s4046_s5 + $0x1d0] sm:$0xff] }
 0x249   :  { %v1263_v6 = vrot.slane %v1237_v39, %v1246_v1  ;;  %v2068_v39 = vld [vmem:[%s4046_s5 + $0x1d8] sm:$0xff] }
 0x24a   :  { %v1240_v14 = vcombine.high %v1236_v5, %v1236_v5  ;;  %v1247_v10 = vrot.slane %v1236_v5, %v1246_v1 }
 0x24b   :  { %v1264_v3 = vcombine.high %v1263_v6, %v1263_v6  ;;  %v1483_v25 = vrot.slane %v1263_v6, %v1381_v8  ;;  %v1581_v9 = vrot.slane %v1263_v6, %v1300_v7  ;;  %v2984_v6 = vpack.c.bf16 %v2068_v39, %v2067_v4  ;;  %v2103_v4 = vld [vmem:[%s4046_s5 + $0x2f0] sm:$0xff]  ;;  %v2104_v39 = vld [vmem:[%s4046_s5 + $0x2f8] sm:$0xff] }
 0x24c   :  { %v1254_v15 = vrot.slane %v1240_v14, %v1246_v1  ;;  %v1255_v17 = vcombine.high %v1247_v10, %v1247_v10  ;;  %v1301_v30 = vrot.slane %v1247_v10, %v1300_v7  ;;  %v1382_v20 = vrot.slane %v1247_v10, %v1381_v8  ;;  %v2051_v1 = vld [vmem:[%s4046_s5 + $0x150] sm:$0xff] }
 0x24d   :  { %v1679_v26 = vrot.slane %v1264_v3, %v1381_v8  ;;  %v1777_v16 = vrot.slane %v1264_v3, %v1300_v7  ;;  %v2960_v5 = vpack.c.bf16 %v2052_v2, %v2051_v1  ;;  %v2987_v10 = vpack.c.bf16 %v2070_v61, %v2069_v13  ;;  %v2055_v3 = vld [vmem:[%s4046_s5 + $0x170] sm:$0xff]  ;;  %v2088_v2 = vld [vmem:[%s4046_s5 + $0x278] sm:$0xff] }
 0x24e   :  { %v1256_v27 = vcombine.high %v1254_v15, %v1254_v15  ;;  %v1479_v28 = vrot.slane %v1255_v17, %v1381_v8  ;;  %v1577_v12 = vrot.slane %v1255_v17, %v1300_v7  ;;  %v1675_v29 = vrot.slane %v1254_v15, %v1381_v8  ;;  %v2071_v17 = vld [vmem:[%s4046_s5 + $0x1f0] sm:$0xff] }
 0x24f   :  { %v1773_v23 = vrot.slane %v1254_v15, %v1300_v7  ;;  %v2056_v15 = vld [vmem:[%s4046_s5 + $0x178] sm:$0xff]  ;;  %v2087_v1 = vld [vmem:[%s4046_s5 + $0x270] sm:$0xff] }
 0x250   :  { %v1305_v18 = vrot.slane %v1256_v27, %v1300_v7  ;;  %v1386_v24 = vrot.slane %v1256_v27, %v1381_v8  ;;  %v3733_v32 = vsel %vm1306_vm1, %v1483_v25, %v1479_v28  ;;  %v3736_v33 = vsel %vm1306_vm1, %v1581_v9, %v1577_v12  ;;  %v2053_v7 = vld [vmem:[%s4046_s5 + $0x160] sm:$0xff]  ;;  %v2054_v8 = vld [vmem:[%s4046_s5 + $0x168] sm:$0xff]  ;;  %v2075_v12 = vld [vmem:[%s4046_s5 + $0x210] sm:$0xff] }
 0x251   :  { %v3748_v37 = vsel %vm1306_vm1, %v1679_v26, %v1675_v29  ;;  %v3751_v38 = vsel %vm1306_vm1, %v1777_v16, %v1773_v23  ;;  %v2963_v14 = vpack.c.bf16 %v2054_v8, %v2053_v7  ;;  %v2966_v22 = vpack.c.bf16 %v2056_v15, %v2055_v3  ;;  %v2073_v25 = vld [vmem:[%s4046_s5 + $0x200] sm:$0xff]  ;;  %v2074_v9 = vld [vmem:[%s4046_s5 + $0x208] sm:$0xff]  ;;  %v2076_v29 = vld [vmem:[%s4046_s5 + $0x218] sm:$0xff] }
 0x252   :  { %v1307_v41 = vsel %vm1306_vm1, %v1305_v18, %v1301_v30  ;;  %v1387_v42 = vsel %vm1306_vm1, %v1386_v24, %v1382_v20  ;;  %v2089_v26 = vld [vmem:[%s4046_s5 + $0x280] sm:$0xff]  ;;  %v2090_v16 = vld [vmem:[%s4046_s5 + $0x288] sm:$0xff]  ;;  %v2993_v27 = vpack.c.bf16 %v2074_v9, %v2073_v25  ;;  %v2091_v30 = vld [vmem:[%s4046_s5 + $0x290] sm:$0xff] }
 0x253   :  { %2524 = vmatmul.mubr.f32.vlgmr.msra.gmra.mrb[2].mxu1 %v1307_v41  ;;  %2559 = vmatmul.mubr.f32.vlgmr.msra.gmra.mrb[2].mxu0 %v1387_v42  ;;  %v3017_v28 = vpack.c.bf16 %v2090_v16, %v2089_v26  ;;  %v2092_v20 = vld [vmem:[%s4046_s5 + $0x298] sm:$0xff]  ;;  %v2077_v18 = vld [vmem:[%s4046_s5 + $0x220] sm:$0xff]  ;;  %v2078_v24 = vld [vmem:[%s4046_s5 + $0x228] sm:$0xff] }
 0x254   :  { %2946 = vmatpush3.bf16.msra.mxu1 %v2945_v21  ;;  %2970 = vmatpush3.bf16.msra.mxu0 %v2969_v19  ;;  %v2072_v21 = vld [vmem:[%s4046_s5 + $0x1f8] sm:$0xff]  ;;  %v2996_v19 = vpack.c.bf16 %v2076_v29, %v2075_v12  ;;  %v3020_v23 = vpack.c.bf16 %v2092_v20, %v2091_v30  ;;  %v2095_v41 = vld [vmem:[%s4046_s5 + $0x2b0] sm:$0xff]  ;;  %v1860_v7 = vld [vmem:[%s4048_s7] sm:$0xff] }
 0x255   :  { %2947 = vmatprep.subr.bf16.mxu1 %v3105_v40  ;;  %2971 = vmatprep.subr.bf16.mxu0 %v3105_v40  ;;  %v2990_v11 = vpack.c.bf16 %v2072_v21, %v2071_v17  ;;  %v2096_v42 = vld [vmem:[%s4046_s5 + $0x2b8] sm:$0xff]  ;;  %v1861_v8 = vld [vmem:[%s4048_s7 + $0x8] sm:$0xff]  ;;  %v1862_v13 = vld [vmem:[%s4048_s7 + $0x10] sm:$0xff] }
 0x256   :  { %2593 = vmatprep.mubr.msk.f32.mxu1 %vm3106_vm0, %v3107_v56  ;;  %2628 = vmatprep.mubr.msk.f32.mxu0 %vm3106_vm0, %v3107_v56  ;;  %v3041_v61 = vpack.c.bf16 %v1861_v8, %v1860_v7  ;;  %v1866_v3 = vld [vmem:[%s4048_s7 + $0x30] sm:$0xff]  ;;  %v1867_v15 = vld [vmem:[%s4048_s7 + $0x38] sm:$0xff]  ;;  %v1868_v21 = vld [vmem:[%s4048_s7 + $0x40] sm:$0xff] }
 0x257   :  { %v3050_v17 = vpack.c.bf16 %v1867_v15, %v1866_v3  ;;  %v1870_v25 = vld [vmem:[%s4048_s7 + $0x50] sm:$0xff]  ;;  %v1871_v9 = vld [vmem:[%s4048_s7 + $0x58] sm:$0xff]  ;;  %v1872_v16 = vld [vmem:[%s4048_s7 + $0x60] sm:$0xff] }
 0x258   :  { %2949 = vmatpush3.bf16.msra.mxu1 %v2948_v43  ;;  %2973 = vmatpush3.bf16.msra.mxu0 %v2972_v44  ;;  %v3002_v43 = vpack.c.bf16 %v2080_v36, %v2079_v35  ;;  %v3026_v44 = vpack.c.bf16 %v2096_v42, %v2095_v41  ;;  %v3056_v26 = vpack.c.bf16 %v1871_v9, %v1870_v25  ;;  %v1874_v12 = vld [vmem:[%s4048_s7 + $0x70] sm:$0xff]  ;;  %v1875_v29 = vld [vmem:[%s4048_s7 + $0x78] sm:$0xff] }
 0x259   :  { %2950 = vmatprep.subr.bf16.mxu1 %v3105_v40  ;;  %2974 = vmatprep.subr.bf16.mxu0 %v3105_v40  ;;  %v3062_v30 = vpack.c.bf16 %v1875_v29, %v1874_v12 }
 0x25c   :  { %2952 = vmatpush3.bf16.msra.mxu1 %v2951_v49  ;;  %2976 = vmatpush3.bf16.msra.mxu0 %v2975_v50  ;;  %v3005_v49 = vpack.c.bf16 %v2082_v46, %v2081_v45  ;;  %v3029_v50 = vpack.c.bf16 %v2098_v48, %v2097_v47  ;;  %v2105_v45 = vld [vmem:[%s4047_s6] ss:$0 sm:$0xff] }
 0x25d   :  { %2953 = vmatprep.subr.bf16.mxu1 %v3105_v40  ;;  %2977 = vmatprep.subr.bf16.mxu0 %v3105_v40 }
 0x260   :  { %2955 = vmatpush3.bf16.msra.mxu1 %v2954_v55  ;;  %2979 = vmatpush3.bf16.msra.mxu0 %v2978_v57  ;;  %v3008_v55 = vpack.c.bf16 %v2084_v52, %v2083_v51  ;;  %v3032_v57 = vpack.c.bf16 %v2100_v54, %v2099_v53 }
 0x261   :  { %2956 = vmatprep.subr.bf16.mxu1 %v3105_v40  ;;  %2980 = vmatprep.subr.bf16.mxu0 %v3105_v40 }
 0x264   :  { %2958 = vmatpush3.bf16.msra.mxu1 %v2957_v63  ;;  %2982 = vmatpush3.bf16.msra.mxu0 %v2981_v0  ;;  %v3011_v63 = vpack.c.bf16 %v2086_v59, %v2085_v58  ;;  %v3035_v0 = vpack.c.bf16 %v2102_v62, %v2101_v60 }
 0x265   :  { %2959 = vmatprep.subr.bf16.mxu1 %v3105_v40  ;;  %2983 = vmatprep.subr.bf16.mxu0 %v3105_v40 }
 0x268   :  { %2961 = vmatpush3.bf16.msra.mxu1 %v2960_v5  ;;  %2985 = vmatpush3.bf16.msra.mxu0 %v2984_v6  ;;  %v3014_v5 = vpack.c.bf16 %v2088_v2, %v2087_v1  ;;  %v3038_v6 = vpack.c.bf16 %v2104_v39, %v2103_v4 }
 0x269   :  { %2962 = vmatprep.subr.bf16.mxu1 %v3105_v40  ;;  %2986 = vmatprep.subr.bf16.mxu0 %v3105_v40 }
 0x26c   :  { %2964 = vmatpush3.bf16.msra.mxu1 %v2963_v14  ;;  %2988 = vmatpush3.bf16.msra.mxu0 %v2987_v10  ;;  %v1865_v14 = vld [vmem:[%s4048_s7 + $0x28] sm:$0xff] }
 0x26d   :  { %2965 = vmatprep.subr.bf16.mxu1 %v3105_v40  ;;  %2989 = vmatprep.subr.bf16.mxu0 %v3105_v40 }
 0x270   :  { %2967 = vmatpush3.bf16.msra.mxu1 %v2966_v22  ;;  %2991 = vmatpush3.bf16.msra.mxu0 %v2990_v11  ;;  %v1869_v22 = vld [vmem:[%s4048_s7 + $0x48] sm:$0xff] }
 0x271   :  { %2992 = vmatprep.subr.bf16.mxu1 %v3105_v40  ;;  %3016 = vmatprep.subr.bf16.mxu0 %v3105_v40  ;;  %v3053_v11 = vpack.c.bf16 %v1869_v22, %v1868_v21 }
 0x273   :  { %2594 = vmatmul.mubr.f32.vlgmr.msra.gmra.mrb[4].mxu1 %v3733_v32  ;;  %2629 = vmatmul.mubr.f32.vlgmr.msra.gmra.mrb[4].mxu0 %v3736_v33  ;;  %v2094_v32 = vld [vmem:[%s4046_s5 + $0x2a8] sm:$0xff]  ;;  %v2999_v33 = vpack.c.bf16 %v2078_v24, %v2077_v18 }
 0x274   :  { %2994 = vmatpush3.bf16.msra.mxu1 %v2993_v27  ;;  %3018 = vmatpush3.bf16.msra.mxu0 %v3017_v28  ;;  %v3023_v34 = vpack.c.bf16 %v2094_v32, %v2093_v31  ;;  %v1873_v27 = vld [vmem:[%s4048_s7 + $0x68] sm:$0xff] }
 0x275   :  { %2995 = vmatprep.subr.bf16.mxu1 %v3105_v40  ;;  %3019 = vmatprep.subr.bf16.mxu0 %v3105_v40  ;;  %v3059_v28 = vpack.c.bf16 %v1873_v27, %v1872_v16 }
 0x276   :  { %2663 = vmatprep.mubr.msk.f32.mxu1 %vm3106_vm0, %v3107_v56  ;;  %2698 = vmatprep.mubr.msk.f32.mxu0 %vm3106_vm0, %v3107_v56 }
 0x278   :  { %2997 = vmatpush3.bf16.msra.mxu1 %v2996_v19  ;;  %3021 = vmatpush3.bf16.msra.mxu0 %v3020_v23 }
 0x279   :  { %2998 = vmatprep.subr.bf16.mxu1 %v3105_v40  ;;  %3022 = vmatprep.subr.bf16.mxu0 %v3105_v40 }
 0x27c   :  { %3000 = vmatpush3.bf16.msra.mxu1 %v2999_v33  ;;  %3024 = vmatpush3.bf16.msra.mxu0 %v3023_v34 }
 0x27d   :  { %3001 = vmatprep.subr.bf16.mxu1 %v3105_v40  ;;  %3025 = vmatprep.subr.bf16.mxu0 %v3105_v40 }
 0x280   :  { %3003 = vmatpush3.bf16.msra.mxu1 %v3002_v43  ;;  %3027 = vmatpush3.bf16.msra.mxu0 %v3026_v44 }
 0x281   :  { %3004 = vmatprep.subr.bf16.mxu1 %v3105_v40  ;;  %3028 = vmatprep.subr.bf16.mxu0 %v3105_v40 }
 0x284   :  { %3006 = vmatpush3.bf16.msra.mxu1 %v3005_v49  ;;  %3030 = vmatpush3.bf16.msra.mxu0 %v3029_v50  ;;  %v2106_v49 = vld [vmem:[%s4049_s8] ss:$0 sm:$0xff] }
 0x285   :  { %3007 = vmatprep.subr.bf16.mxu1 %v3105_v40  ;;  %3031 = vmatprep.subr.bf16.mxu0 %v3105_v40 }
 0x288   :  { %3009 = vmatpush3.bf16.msra.mxu1 %v3008_v55  ;;  %3033 = vmatpush3.bf16.msra.mxu0 %v3032_v57 }
 0x289   :  { %3010 = vmatprep.subr.bf16.mxu1 %v3105_v40  ;;  %3034 = vmatprep.subr.bf16.mxu0 %v3105_v40 }
 0x28c   :  { %3012 = vmatpush3.bf16.msra.mxu1 %v3011_v63  ;;  %3036 = vmatpush3.bf16.msra.mxu0 %v3035_v0 }
 0x28d   :  { %3013 = vmatprep.subr.bf16.mxu1 %v3105_v40  ;;  %3037 = vmatprep.subr.bf16.mxu0 %v3105_v40 }
 0x290   :  { %3015 = vmatpush3.bf16.msra.mxu1 %v3014_v5  ;;  %3039 = vmatpush3.bf16.msra.mxu0 %v3038_v6 }
 0x291   :  { %3040 = vmatprep.subr.bf16.mxu1 %v3105_v40 }
 0x293   :  { %2664 = vmatmul.mubr.f32.vlgmr.msra.gmra.mrb[6].mxu1 %v3748_v37  ;;  %2699 = vmatmul.mubr.f32.vlgmr.msra.gmra.mrb[6].mxu0 %v3751_v38  ;;  %v1863_v37 = vld [vmem:[%s4048_s7 + $0x18] sm:$0xff] }
 0x294   :  { %2733 = vmatprep.mubr.msk.f32.mxu1 %vm3106_vm0, %v3107_v56  ;;  %3042 = vmatpush3.bf16.msra.mxu1 %v3041_v61  ;;  %v3044_v38 = vpack.c.bf16 %v1863_v37, %v1862_v13  ;;  %v1864_v56 = vld [vmem:[%s4048_s7 + $0x20] sm:$0xff] }
 0x295   :  { %3043 = vmatprep.subr.bf16.mxu1 %v3105_v40  ;;  %v3047_v10 = vpack.c.bf16 %v1865_v14, %v1864_v56 }
 0x298   :  { %3045 = vmatpush3.bf16.msra.mxu1 %v3044_v38 }
 0x299   :  { %3046 = vmatprep.subr.bf16.mxu1 %v3105_v40 }
 0x29c   :  { %3048 = vmatpush3.bf16.msra.mxu1 %v3047_v10 }
 0x29d   :  { %3049 = vmatprep.subr.bf16.mxu1 %v3105_v40 }
 0x2a0   :  { %3051 = vmatpush3.bf16.msra.mxu1 %v3050_v17 }
 0x2a1   :  { %3052 = vmatprep.subr.bf16.mxu1 %v3105_v40 }
 0x2a4   :  { %3054 = vmatpush3.bf16.msra.mxu1 %v3053_v11 }
 0x2a5   :  { %3055 = vmatprep.subr.bf16.mxu1 %v3105_v40 }
 0x2a8   :  { %3057 = vmatpush3.bf16.msra.mxu1 %v3056_v26 }
 0x2a9   :  { %3058 = vmatprep.subr.bf16.mxu1 %v3105_v40 }
 0x2ac   :  { %3060 = vmatpush3.bf16.msra.mxu1 %v3059_v28 }
 0x2ad   :  { %3061 = vmatprep.subr.bf16.mxu1 %v3105_v40 }
 0x2b0   :  { %3063 = vmatpush3.bf16.msra.mxu1 %v3062_v30 }
 0x326   :  { %v1375_v20 = vpop.f32.mrb[2].mxu1  ;;  %v1455_v19 = vpop.f32.mrb[2].mxu0 }
 0x327   :  { %v1456_v23 = vadd.f32 %v1455_v19, %v1375_v20  ;;  %v2525_v18 = vpop.f32.mrb[3].mxu1  ;;  %v2560_v24 = vpop.f32.mrb[3].mxu0 }
 0x346   :  { %v1552_v31 = vpop.f32.mrb[4].mxu1  ;;  %v1650_v32 = vpop.f32.mrb[4].mxu0 }
 0x347   :  { %v1556_v33 = vadd.f32 %v1552_v31, %v1456_v23  ;;  %v2595_v34 = vpop.f32.mrb[5].mxu1  ;;  %v2630_v40 = vpop.f32.mrb[5].mxu0 }
 0x349   :  { %v1654_v35 = vadd.f32 %v1650_v32, %v1556_v33 }
 0x366   :  { %v1748_v36 = vpop.f32.mrb[6].mxu1  ;;  %v1846_v41 = vpop.f32.mrb[6].mxu0 }
 0x367   :  { %v1752_v42 = vadd.f32 %v1748_v36, %v1654_v35  ;;  %v2665_v43 = vpop.f32.mrb[7].mxu1  ;;  %v2700_v44 = vpop.f32.mrb[7].mxu0 }
 0x369   :  { %v1850_v46 = vadd.f32 %v1846_v41, %v1752_v42 }
 0x36b   :  { %v1858_v47 = vadd.f32 %v2105_v45, %v1850_v46 }
 0x36d   :  { %v1859_v48 = vmax.f32 %v1858_v47, 0.0 }
 0x36f   :  { %2734 = vmatmul.mubr.f32.vlgmr.msra.gmra.mrb[8].mxu1 %v1859_v48 }
 0x442   :  { %v1949_v50 = vpop.f32.mrb[8].mxu1 }
 0x443   :  { %v1950_v51 = vadd.f32 %v2106_v49, %v1949_v50  ;;  %v2735_v52 = vpop.f32.mrb[9].mxu1 }
 0x445   :  { %v1953_v53 = vmax.f32 %v1950_v51, 0.0 }
 0x447   :  { %1954 = vst [vmem:[#allocation2] sm:$0x3] %v1953_v53 }
 0x448   :  { %3091 = shalt.err (!%p3088_p4)
}
 0x449   :  { %s3092_s3 = scalar_lea.hbm %s4050_s9, 32 }
 0x44a   :  { %p3093_p5 = scmp.ne.s32.totalorder %s4050_s9, %s3092_s3  ;;  %p3096_p6 = scmp.lt.u32.totalorder %s3092_s3, %s4050_s9 }
 0x44c   :  { %p3098_p7 = pnand %p3096_p6, %p3093_p5 }
 0x44e   :  { %3101 = shalt.err (!%p3098_p7)
}
 0x44f   :  { %1964 = dma.vmem_to_hbm [thread:$0]  %s1962_s19, 32, %s4050_s9, [#allocation3]  }
 0x450   :  { %3102 = dma.done.wait [#allocation3], 32  }
 0x451   :  { %3103 = vsyncadd [#allocation3], 4294967264 }
 0x452   :  { %1968 = vsyncpa [#allocation3], 1 }

</bundles_post_ra>
